<compile_context>
chip_gen: v7x
topology: tpu7x:2x2x1
jax: 0.10.0
libtpu: 0.0.40
codegen_flags: <defaults>
</compile_context>

<pallas_src>
import jax
import jax.numpy as jnp
from jax.experimental import pallas as pl
from jax.experimental.pallas import tpu as pltpu

DOWN = 4                      # encoder output stride (synthetic 4x4 avg-pool stem)
COMPUTE_DT = jnp.bfloat16     # MXU operand dtype for the head matmuls (f32 accumulate)


# ---------------------------------------------------------------------------
# Generation-aware configuration (VMEM limit, tile targets, EUP dtype)
# ---------------------------------------------------------------------------

def _tpu_config():
    kind = ""
    try:
        kind = jax.devices()[0].device_kind.lower()
    except Exception:
        pass
    vmem = None
    try:
        vmem = int(getattr(pltpu.get_tpu_info(), "vmem_capacity_bytes", 0)) or None
    except Exception:
        vmem = None
    if vmem is None:
        # conservative fallback: assume the small (v7x, 64 MiB) VMEM unless the
        # device kind clearly says otherwise
        vmem = (128 * 1024 * 1024
                if any(t in kind for t in ("v4", "v5", "v6")) else 64 * 1024 * 1024)
    small_vmem = vmem <= 96 * 1024 * 1024
    return {
        "vmem_limit": (48 if small_vmem else 100) * 1024 * 1024,
        "ts_target": 4096 if small_vmem else 8192,   # backbone lane-tile target
        "th_target": 128 if small_vmem else 256,     # upsample output-row tile
        "bf16_eup": ("v6" in kind) or ("v7" in kind),  # bf16 exp only off v5e
    }


_CFG = _tpu_config()


def _tile(dim, n_outer, target, align):
    """Largest legal tile <= target.  If the outer (parallel) grid axis alone
    cannot feed 2 TensorCores, split `dim` so the total grid has >= 2 steps."""
    if dim <= target:
        if n_outer >= 2 or dim <= 2 * align:
            return dim                                   # full extent (always legal)
        return ((dim + 2 * align - 1) // (2 * align)) * align
    return target


# ---------------------------------------------------------------------------
# Fused backbone kernels (transposed layout: [channels, spatial-lanes])
# ---------------------------------------------------------------------------

def _stem_feat(x, wfT, bf):
    """K=3 stem 1x1 conv as f32 VPU FMAs (outer-product accumulate)."""
    F = wfT.shape[0]
    feat = jnp.broadcast_to(bf, (F, x.shape[1]))          # [F, TS] bias
    for k in range(x.shape[0]):                           # Cin: tiny, static
        feat = feat + wfT[:, k:k + 1] * x[k:k + 1, :]
    return jnp.maximum(feat, 0.0)                         # f32 relu (v5e-safe)


def _teacher_kernel(x_ref, wfT_ref, bf_ref, wpT_ref, bp_ref, out_ref):
    feat = _stem_feat(x_ref[0], wfT_ref[...], bf_ref[...])            # [F, TS]
    pred = jnp.dot(wpT_ref[...], feat.astype(COMPUTE_DT),
                   preferred_element_type=jnp.float32) + bp_ref[...]  # [nc, TS]
    out_ref[0] = pred.astype(out_ref.dtype)


def _student_kernel(x_ref, wfT_ref, bf_ref, whT_ref, bh_ref,
                    wu1T_ref, bu1_ref, wu2T_ref, bu2_ref, out_ref):
    feat = _stem_feat(x_ref[0], wfT_ref[...], bf_ref[...])            # [F, TS]
    fb = feat.astype(COMPUTE_DT)
    heads = jnp.dot(whT_ref[...], fb,
                    preferred_element_type=jnp.float32) + bh_ref[...]  # [nc+rep, TS]
    hid = jnp.maximum(jnp.dot(wu1T_ref[...], fb,
                              preferred_element_type=jnp.float32) + bu1_ref[...], 0.0)
    unc = jnp.dot(wu2T_ref[...], hid.astype(COMPUTE_DT),
                  preferred_element_type=jnp.float32) + bu2_ref[...]   # [out, TS]
    # single merged, lane-dense output slab: pred | rep | uncertainty
    out_ref[0] = jnp.concatenate([heads, unc], axis=0).astype(out_ref.dtype)


def teacher_backbone(params, x_pool):
    """x_pool: [B, Cin, S] pooled NCHW rows -> pred logits [B, nc, S]."""
    B, Cin, S = x_pool.shape
    F = params['w_feat'].shape[1]
    nc = params['w_pred'].shape[1]
    wfT = params['w_feat'].T                              # [F, Cin] f32 stem
    bf = params['b_feat'].reshape(F, 1)
    wpT = params['w_pred'].T.astype(COMPUTE_DT)           # pre-cast once (bf16)
    bp = params['b_pred'].reshape(nc, 1)
    TS = _tile(S, B, _CFG["ts_target"], 128)
    grid = (B, pl.cdiv(S, TS))
    flops = 2 * B * S * (Cin * F + F * nc)
    nbytes = 4 * B * S * (Cin + nc) + 4 * (Cin * F + F + nc) + 2 * F * nc
    return pl.pallas_call(
        _teacher_kernel,
        out_shape=jax.ShapeDtypeStruct((B, nc, S), jnp.float32),
        grid=grid,
        in_specs=[
            pl.BlockSpec((1, Cin, TS), lambda b, s: (b, 0, s)),
            pl.BlockSpec((F, Cin), lambda b, s: (0, 0)),
            pl.BlockSpec((F, 1), lambda b, s: (0, 0)),
            pl.BlockSpec((nc, F), lambda b, s: (0, 0)),
            pl.BlockSpec((nc, 1), lambda b, s: (0, 0)),
        ],
        out_specs=pl.BlockSpec((1, nc, TS), lambda b, s: (b, 0, s)),
        compiler_params=pltpu.CompilerParams(
            dimension_semantics=("parallel", "parallel"),
            vmem_limit_bytes=_CFG["vmem_limit"]),
        cost_estimate=pl.CostEstimate(flops=int(flops), transcendentals=0,
                                      bytes_accessed=int(nbytes)),
    )(x_pool, wfT, bf, wpT, bp)


def student_backbone(model_params, uncer_params, x_pool):
    """x_pool: [NB, Cin, S] -> merged [NB, nc+rep+out, S] (pred | rep | uncertainty)."""
    NB, Cin, S = x_pool.shape
    F = model_params['w_feat'].shape[1]
    nc = model_params['w_pred'].shape[1]
    rep = model_params['w_rep'].shape[1]
    Fu = uncer_params['w_u1'].shape[1]
    out = uncer_params['w_u2'].shape[1]
    Nh = nc + rep
    Ctot = Nh + out
    # pre-transposed / pre-cast weights (halves weight DMA, no per-step casts)
    wfT = model_params['w_feat'].T                         # [F, Cin] f32 stem
    bf = model_params['b_feat'].reshape(F, 1)
    whT = jnp.concatenate([model_params['w_pred'], model_params['w_rep']],
                          axis=1).T.astype(COMPUTE_DT)     # [Nh, F]
    bh = jnp.concatenate([model_params['b_pred'],
                          model_params['b_rep']]).reshape(Nh, 1)
    wu1T = uncer_params['w_u1'].T.astype(COMPUTE_DT)       # [Fu, F]
    bu1 = uncer_params['b_u1'].reshape(Fu, 1)
    wu2T = uncer_params['w_u2'].T.astype(COMPUTE_DT)       # [out, Fu]
    bu2 = uncer_params['b_u2'].reshape(out, 1)
    TS = _tile(S, NB, _CFG["ts_target"], 128)
    grid = (NB, pl.cdiv(S, TS))
    flops = 2 * NB * S * (Cin * F + F * Nh + F * Fu + Fu * out)
    nbytes = 4 * NB * S * (Cin + Ctot) + 4 * (Cin * F + F + Ctot + Fu) \
        + 2 * F * (Nh + Fu) + 2 * Fu * out
    return pl.pallas_call(
        _student_kernel,
        out_shape=jax.ShapeDtypeStruct((NB, Ctot, S), jnp.float32),
        grid=grid,
        in_specs=[
            pl.BlockSpec((1, Cin, TS), lambda b, s: (b, 0, s)),
            pl.BlockSpec((F, Cin), lambda b, s: (0, 0)),
            pl.BlockSpec((F, 1), lambda b, s: (0, 0)),
            pl.BlockSpec((Nh, F), lambda b, s: (0, 0)),
            pl.BlockSpec((Nh, 1), lambda b, s: (0, 0)),
            pl.BlockSpec((Fu, F), lambda b, s: (0, 0)),
            pl.BlockSpec((Fu, 1), lambda b, s: (0, 0)),
            pl.BlockSpec((out, Fu), lambda b, s: (0, 0)),
            pl.BlockSpec((out, 1), lambda b, s: (0, 0)),
        ],
        out_specs=pl.BlockSpec((1, Ctot, TS), lambda b, s: (b, 0, s)),
        compiler_params=pltpu.CompilerParams(
            dimension_semantics=("parallel", "parallel"),
            vmem_limit_bytes=_CFG["vmem_limit"]),
        cost_estimate=pl.CostEstimate(flops=int(flops), transcendentals=0,
                                      bytes_accessed=int(nbytes)),
    )(x_pool, wfT, bf, whT, bh, wu1T, bu1, wu2T, bu2)


# ---------------------------------------------------------------------------
# Fused bilinear upsample (+ optional softmax-max/argmax) kernel
# ---------------------------------------------------------------------------

def _interp_matrix(out_size, in_size):
    """align_corners=True 1-D bilinear interpolation matrix [out, in]."""
    if in_size == 1:
        return jnp.ones((out_size, 1), jnp.float32)
    pos = jnp.arange(out_size, dtype=jnp.float32) * ((in_size - 1) / (out_size - 1))
    lo = jnp.clip(jnp.floor(pos).astype(jnp.int32), 0, in_size - 2)
    frac = pos - lo.astype(jnp.float32)
    rows = jnp.arange(out_size)
    M = jnp.zeros((out_size, in_size), jnp.float32)
    M = M.at[rows, lo].add(1.0 - frac)
    M = M.at[rows, lo + 1].add(frac)
    return M


def _upsample_body(x_ref, mh_ref, mwt_ref, out_ref):
    """Separable bilinear per channel as two plain 2D MXU matmuls
    (no broadcast_to / batched einsum):  y_c = (Mh_tile @ x_c) @ Mw^T."""
    mh = mh_ref[...]                      # [TH, h]
    mwt = mwt_ref[...]                    # [w, W]
    ys = []
    for c in range(x_ref.shape[1]):       # static channel loop
        t = jnp.dot(mh, x_ref[0, c], preferred_element_type=jnp.float32)   # [TH, w]
        y = jnp.dot(t, mwt, preferred_element_type=jnp.float32)            # [TH, W]
        out_ref[0, c] = y.astype(out_ref.dtype)
        ys.append(y)
    return ys


def _upsample_kernel(x_ref, mh_ref, mwt_ref, out_ref):
    _upsample_body(x_ref, mh_ref, mwt_ref, out_ref)


def _upsample_softmax_kernel(x_ref, mh_ref, mwt_ref, out_ref, logit_ref, label_ref):
    ys = _upsample_body(x_ref, mh_ref, mwt_ref, out_ref)
    C = len(ys)
    m = ys[0]
    for y in ys[1:]:
        m = jnp.maximum(m, y)                               # channel max   [TH, W]
    denom = jnp.zeros_like(m)
    lbl = jnp.full(m.shape, C - 1, jnp.int32)
    for c in range(C - 1, -1, -1):                          # reverse: first max wins
        z = ys[c] - m
        if _CFG["bf16_eup"]:                                # bf16 EUP exp (v6e/v7x)
            e = jnp.exp(z.astype(jnp.bfloat16)).astype(jnp.float32)
        else:                                               # f32 on v5e
            e = jnp.exp(z)
        denom = denom + e
        lbl = jnp.where(ys[c] >= m, c, lbl)
    logit_ref[0] = pl.reciprocal(denom, approx=True)        # max softmax prob = 1/denom
    label_ref[0] = lbl


def bilinear_upsample(x, out_hw, *, with_softmax=False):
    """x: [N, C, h, w] -> [N, C, H, W] (align_corners=True).  With
    with_softmax=True also returns (max softmax prob, argmax) over C computed
    while the full-res tile is still resident in VMEM."""
    N, C, h, w = x.shape
    H, W = out_hw
    Mh = _interp_matrix(H, h)                   # [H, h]
    MwT = _interp_matrix(W, w).T                # [w, W]
    TH = _tile(H, N, _CFG["th_target"], 8)
    grid = (N, pl.cdiv(H, TH))
    in_specs = [
        pl.BlockSpec((1, C, h, w), lambda i, j: (i, 0, 0, 0)),
        pl.BlockSpec((TH, h), lambda i, j: (j, 0)),
        pl.BlockSpec((w, W), lambda i, j: (0, 0)),
    ]
    cparams = pltpu.CompilerParams(
        dimension_semantics=("parallel", "parallel"),
        vmem_limit_bytes=_CFG["vmem_limit"])
    flops = 2 * N * C * (H * h * w + H * w * W)
    nbytes = 4 * (N * C * (h * w + H * W) + H * h + w * W)
    if not with_softmax:
        return pl.pallas_call(
            _upsample_kernel,
            out_shape=jax.ShapeDtypeStruct((N, C, H, W), jnp.float32),
            grid=grid,
            in_specs=in_specs,
            out_specs=pl.BlockSpec((1, C, TH, W), lambda i, j: (i, 0, j, 0)),
            compiler_params=cparams,
            cost_estimate=pl.CostEstimate(flops=int(flops), transcendentals=0,
                                          bytes_accessed=int(nbytes)),
        )(x, Mh, MwT)
    return pl.pallas_call(
        _upsample_softmax_kernel,
        out_shape=(jax.ShapeDtypeStruct((N, C, H, W), jnp.float32),
                   jax.ShapeDtypeStruct((N, H, W), jnp.float32),
                   jax.ShapeDtypeStruct((N, H, W), jnp.int32)),
        grid=grid,
        in_specs=in_specs,
        out_specs=(pl.BlockSpec((1, C, TH, W), lambda i, j: (i, 0, j, 0)),
                   pl.BlockSpec((1, TH, W), lambda i, j: (i, j, 0)),
                   pl.BlockSpec((1, TH, W), lambda i, j: (i, j, 0))),
        compiler_params=cparams,
        cost_estimate=pl.CostEstimate(flops=int(flops),
                                      transcendentals=int(N * C * H * W),
                                      bytes_accessed=int(nbytes + 8 * N * H * W)),
    )(x, Mh, MwT)


# ---------------------------------------------------------------------------
# Model_with_un_single.forward
# ---------------------------------------------------------------------------

def _pool_nchw(x):
    """NCHW image -> 4x4 avg-pooled stem, kept NCHW and flattened: [B, C, h*w]."""
    B, C, H, W = x.shape
    h, w = H // DOWN, W // DOWN
    xp = x.reshape(B, C, h, DOWN, w, DOWN).mean(axis=(3, 5))       # [B, C, h, w]
    return xp.reshape(B, C, h * w)                                  # reshape only


def model_with_un_single_forward(model_params, ema_params, uncer_params,
                                 train_l_image, train_u_image):
    B, Cin, H, W = train_u_image.shape
    h, w = H // DOWN, W // DOWN
    nc = model_params['w_pred'].shape[1]
    rep_dim = model_params['w_rep'].shape[1]
    un_dim = uncer_params['w_u2'].shape[1]

    # --- teacher (EMA) branch: no_grad in torch; pure inference here ---
    pred_u_t = teacher_backbone(ema_params, _pool_nchw(train_u_image))
    pred_u_t = pred_u_t.reshape(B, nc, h, w)          # already NCHW -> reshape only
    pred_u_large_raw, pseudo_logits, pseudo_labels = bilinear_upsample(
        pred_u_t, (H, W), with_softmax=True)

    # TODO(synk): batch_transform / generate_cut are stochastic augmentations
    # (random scale/crop + CutMix) with no deterministic Pallas equivalent;
    # treated as identity passthrough here.
    train_u_aug_image = train_u_image
    train_u_aug_label = pseudo_labels
    train_u_aug_logits = pseudo_logits

    # --- student branch: labeled + unlabeled share weights -> one fused call ---
    x_lu = jnp.concatenate([train_l_image, train_u_aug_image], axis=0)   # [2B,Cin,H,W]
    fused = student_backbone(model_params, uncer_params, _pool_nchw(x_lu))
    fused = fused.reshape(2 * B, nc + rep_dim + un_dim, h, w)            # NCHW low-res
    pred_all = fused[:, :nc]                                             # [2B, nc, h, w]
    rep_all = fused[:, nc:nc + rep_dim]                                  # [2B, rep, h, w]
    uncer_all = fused[:, nc + rep_dim:]                                  # [2B, out, h, w]

    pred_large = bilinear_upsample(pred_all, train_l_image.shape[2:])    # [2B, nc, H, W]
    pred_l_large, pred_u_large = pred_large[:B], pred_large[B:]

    return (pred_l_large, pred_u_large, train_u_aug_label, train_u_aug_logits,
            rep_all, pred_all, pred_u_large_raw, uncer_all)


# ---------------------------------------------------------------------------
# Pure-JAX reference (for correctness check) and parameter construction
# ---------------------------------------------------------------------------

def _reference_forward(model_params, ema_params, uncer_params,
                       train_l_image, train_u_image):
    def pool(x):
        B, C, H, W = x.shape
        return x.reshape(B, C, H // DOWN, DOWN, W // DOWN, DOWN).mean(axis=(3, 5))

    def backbone(p, x):
        xp = pool(x)
        B, C, h, w = xp.shape
        xr = xp.transpose(0, 2, 3, 1).reshape(-1, C)
        feat = jax.nn.relu(xr @ p['w_feat'] + p['b_feat'])
        pred = feat @ p['w_pred'] + p['b_pred']
        rep = feat @ p['w_rep'] + p['b_rep']
        tonchw = lambda a: a.reshape(B, h, w, -1).transpose(0, 3, 1, 2)
        return tonchw(pred), tonchw(rep), tonchw(feat)

    def uncer_head(p, feat_nchw):
        B, F, h, w = feat_nchw.shape
        fr = feat_nchw.transpose(0, 2, 3, 1).reshape(-1, F)
        hid = jax.nn.relu(fr @ p['w_u1'] + p['b_u1'])
        out = hid @ p['w_u2'] + p['b_u2']
        return out.reshape(B, h, w, -1).transpose(0, 3, 1, 2)

    def upsample(x, HW):
        _, _, h, w = x.shape
        Mh = _interp_matrix(HW[0], h)
        Mw = _interp_matrix(HW[1], w)
        return jnp.einsum('Hh,nchw,Ww->ncHW', Mh, x, Mw)

    B, _, H, W = train_u_image.shape
    pred_u_t, _, _ = backbone(ema_params, train_u_image)
    pred_u_large_raw = upsample(pred_u_t, (H, W))
    sm = jax.nn.softmax(pred_u_large_raw, axis=1)
    pseudo_logits = jnp.max(sm, axis=1)
    pseudo_labels = jnp.argmax(sm, axis=1).astype(jnp.int32)
    x_lu = jnp.concatenate([train_l_image, train_u_image], axis=0)
    pred_all, rep_all, feat_all = backbone(model_params, x_lu)
    uncer_all = uncer_head(uncer_params, feat_all)
    pred_large = upsample(pred_all, (H, W))
    return (pred_large[:B], pred_large[B:], pseudo_labels, pseudo_logits,
            rep_all, pred_all, pred_u_large_raw, uncer_all)


def init_backbone_params(key, in_ch, feat_dim, num_classes, output_dim):
    k0, k1, k2 = jax.random.split(key, 3)
    return {
        'w_feat': jax.random.normal(k0, (in_ch, feat_dim), jnp.float32) * 0.2,
        'b_feat': jnp.zeros((feat_dim,), jnp.float32),
        'w_pred': jax.random.normal(k1, (feat_dim, num_classes), jnp.float32) * 0.2,
        'b_pred': jnp.zeros((num_classes,), jnp.float32),
        'w_rep': jax.random.normal(k2, (feat_dim, output_dim), jnp.float32) * 0.2,
        'b_rep': jnp.zeros((output_dim,), jnp.float32),
    }


def init_uncer_params(key, feat_dim, output_dim):
    k0, k1 = jax.random.split(key, 2)
    return {
        'w_u1': jax.random.normal(k0, (feat_dim, feat_dim), jnp.float32) * 0.2,
        'b_u1': jnp.zeros((feat_dim,), jnp.float32),
        'w_u2': jax.random.normal(k1, (feat_dim, output_dim), jnp.float32) * 0.2,
        'b_u2': jnp.zeros((output_dim,), jnp.float32),
    }


if __name__ == "__main__":
    B, Cin, H, W = 2, 3, 16, 16
    num_classes, output_dim, feat_dim = 6, 16, 32

    key = jax.random.PRNGKey(0)
    k_img_l, k_img_u, k_model, k_uncer = jax.random.split(key, 4)

    train_l_image = jax.random.normal(k_img_l, (B, Cin, H, W), jnp.float32)
    train_u_image = jax.random.normal(k_img_u, (B, Cin, H, W), jnp.float32)

    model_params = init_backbone_params(k_model, Cin, feat_dim, num_classes, output_dim)
    # ema_model = copy.deepcopy(self.model) -> identical weights at step 0
    ema_params = jax.tree_util.tree_map(lambda a: a, model_params)
    uncer_params = init_uncer_params(k_uncer, feat_dim, output_dim)

    fwd = jax.jit(model_with_un_single_forward)
    outs = fwd(model_params, ema_params, uncer_params, train_l_image, train_u_image)
    jax.block_until_ready(outs)

    # shape sanity (matches torch semantics)
    assert outs[0].shape == (B, num_classes, H, W)                     # pred_l_large
    assert outs[1].shape == (B, num_classes, H, W)                     # pred_u_large
    assert outs[2].shape == (B, H, W) and outs[2].dtype == jnp.int32   # pseudo labels
    assert outs[3].shape == (B, H, W)                                  # pseudo logits
    assert outs[4].shape == (2 * B, output_dim, H // 4, W // 4)        # rep_all
    assert outs[5].shape == (2 * B, num_classes, H // 4, W // 4)       # pred_all
    assert outs[6].shape == (B, num_classes, H, W)                     # pred_u_large_raw
    assert outs[7].shape == (2 * B, output_dim, H // 4, W // 4)        # uncer_all

    # numerical check against a pure-JAX reference (loose tol covers the
    # bf16 head matmuls / bf16 exp / approx reciprocal used for speed).
    ref = _reference_forward(model_params, ema_params, uncer_params,
                             train_l_image, train_u_image)
    names = ["pred_l_large", "pred_u_large", "pseudo_labels", "pseudo_logits",
             "rep_all", "pred_all", "pred_u_large_raw", "uncer_all"]
    for idx in (0, 1, 3, 4, 5, 6, 7):                  # continuous outputs only
        err = float(jnp.max(jnp.abs(outs[idx] - ref[idx])))
        assert err < 5e-2, f"{names[idx]}: max abs err {err}"

    print("KERNEL_OK")
</pallas_src>

<mosaic_0001>
module attributes {stable_mosaic.version = 11 : i64} {
  func.func private @main(%arg0: i32) attributes {dimension_semantics = [#tpu.dimension_semantics<core_parallel>], iteration_bounds = array<i64: 2>, tpu.core_type = #tpu.core_type<sc_scalar_subcore>, window_params = []} {
    return
  }
}

module attributes {stable_mosaic.version = 11 : i64} {
  func.func private @main(%arg0: i32) attributes {dimension_semantics = [#tpu.dimension_semantics<core_parallel>], iteration_bounds = array<i64: 2>, tpu.core_type = #tpu.core_type<sc_scalar_subcore>, window_params = []} {
    return
  }
}

module attributes {stable_mosaic.version = 11 : i64} {
  func.func @_student_kernel(%arg0: i32, %arg1: i32, %arg2: memref<1x3x16xf32, #tpu.memory_space<vmem>>, %arg3: memref<32x3xf32, #tpu.memory_space<vmem>>, %arg4: memref<32x1xf32, #tpu.memory_space<vmem>>, %arg5: memref<22x32xbf16, #tpu.memory_space<vmem>>, %arg6: memref<22x1xf32, #tpu.memory_space<vmem>>, %arg7: memref<32x32xbf16, #tpu.memory_space<vmem>>, %arg8: memref<32x1xf32, #tpu.memory_space<vmem>>, %arg9: memref<16x32xbf16, #tpu.memory_space<vmem>>, %arg10: memref<16x1xf32, #tpu.memory_space<vmem>>, %arg11: memref<1x38x16xf32, #tpu.memory_space<vmem>>) attributes {dimension_semantics = [#tpu.dimension_semantics<parallel>, #tpu.dimension_semantics<parallel>], iteration_bounds = array<i64: 4, 1>, scalar_prefetch = 0 : i64, scratch_operands = 0 : i64, tpu.core_type = #tpu.core_type<tc>, window_params = [{transform_indices = @transform_0, window_bounds = array<i64: 1, 3, 16>}, {pipeline_mode = #tpu.pipeline_mode<synchronous>, transform_indices = @transform_1, window_bounds = array<i64: 32, 3>}, {pipeline_mode = #tpu.pipeline_mode<synchronous>, transform_indices = @transform_2, window_bounds = array<i64: 32, 1>}, {pipeline_mode = #tpu.pipeline_mode<synchronous>, transform_indices = @transform_3, window_bounds = array<i64: 22, 32>}, {pipeline_mode = #tpu.pipeline_mode<synchronous>, transform_indices = @transform_4, window_bounds = array<i64: 22, 1>}, {pipeline_mode = #tpu.pipeline_mode<synchronous>, transform_indices = @transform_5, window_bounds = array<i64: 32, 32>}, {pipeline_mode = #tpu.pipeline_mode<synchronous>, transform_indices = @transform_6, window_bounds = array<i64: 32, 1>}, {pipeline_mode = #tpu.pipeline_mode<synchronous>, transform_indices = @transform_7, window_bounds = array<i64: 16, 32>}, {pipeline_mode = #tpu.pipeline_mode<synchronous>, transform_indices = @transform_8, window_bounds = array<i64: 16, 1>}, {transform_indices = @transform_9, window_bounds = array<i64: 1, 38, 16>}]} {
    %c0 = arith.constant 0 : index
    %c0_0 = arith.constant 0 : index
    %c0_1 = arith.constant 0 : index
    %0 = vector.load %arg2[%c0, %c0_0, %c0_1] : memref<1x3x16xf32, #tpu.memory_space<vmem>>, vector<1x3x16xf32>
    %1 = vector.shape_cast %0 : vector<1x3x16xf32> to vector<3x16xf32>
    %c0_2 = arith.constant 0 : index
    %c0_3 = arith.constant 0 : index
    %2 = vector.load %arg3[%c0_2, %c0_3] : memref<32x3xf32, #tpu.memory_space<vmem>>, vector<32x3xf32>
    %c0_4 = arith.constant 0 : index
    %c0_5 = arith.constant 0 : index
    %3 = vector.load %arg4[%c0_4, %c0_5] : memref<32x1xf32, #tpu.memory_space<vmem>>, vector<32x1xf32>
    %4 = vector.shape_cast %3 : vector<32x1xf32> to vector<32x1xf32>
    %5 = vector.broadcast %4 : vector<32x1xf32> to vector<32x16xf32>
    %6 = vector.extract_strided_slice %2 {offsets = [0, 0], sizes = [32, 1], strides = [1, 1]} : vector<32x3xf32> to vector<32x1xf32>
    %7 = vector.extract_strided_slice %1 {offsets = [0, 0], sizes = [1, 16], strides = [1, 1]} : vector<3x16xf32> to vector<1x16xf32>
    %8 = vector.broadcast %6 : vector<32x1xf32> to vector<32x16xf32>
    %9 = vector.broadcast %7 : vector<1x16xf32> to vector<32x16xf32>
    %10 = arith.mulf %8, %9 : vector<32x16xf32>
    %11 = arith.addf %5, %10 : vector<32x16xf32>
    %12 = vector.extract_strided_slice %2 {offsets = [0, 1], sizes = [32, 1], strides = [1, 1]} : vector<32x3xf32> to vector<32x1xf32>
    %13 = vector.extract_strided_slice %1 {offsets = [1, 0], sizes = [1, 16], strides = [1, 1]} : vector<3x16xf32> to vector<1x16xf32>
    %14 = vector.broadcast %12 : vector<32x1xf32> to vector<32x16xf32>
    %15 = vector.broadcast %13 : vector<1x16xf32> to vector<32x16xf32>
    %16 = arith.mulf %14, %15 : vector<32x16xf32>
    %17 = arith.addf %11, %16 : vector<32x16xf32>
    %18 = vector.extract_strided_slice %2 {offsets = [0, 2], sizes = [32, 1], strides = [1, 1]} : vector<32x3xf32> to vector<32x1xf32>
    %19 = vector.extract_strided_slice %1 {offsets = [2, 0], sizes = [1, 16], strides = [1, 1]} : vector<3x16xf32> to vector<1x16xf32>
    %20 = vector.broadcast %18 : vector<32x1xf32> to vector<32x16xf32>
    %21 = vector.broadcast %19 : vector<1x16xf32> to vector<32x16xf32>
    %22 = arith.mulf %20, %21 : vector<32x16xf32>
    %23 = arith.addf %17, %22 : vector<32x16xf32>
    %cst = arith.constant 0.000000e+00 : f32
    %24 = vector.broadcast %cst : f32 to vector<32x16xf32>
    %25 = arith.maximumf %23, %24 : vector<32x16xf32>
    %26 = arith.truncf %25 : vector<32x16xf32> to vector<32x16xbf16>
    %c0_6 = arith.constant 0 : index
    %c0_7 = arith.constant 0 : index
    %27 = vector.load %arg5[%c0_6, %c0_7] : memref<22x32xbf16, #tpu.memory_space<vmem>>, vector<22x32xbf16>
    %cst_8 = arith.constant dense<0.000000e+00> : vector<22x16xf32>
    %28 = tpu.matmul %27, %26, %cst_8 {dimension_numbers = #tpu.dot_dimension_numbers<[1], [0], [0], [1], [0, 0, 1, 1], [], []>} : vector<22x32xbf16>, vector<32x16xbf16>, vector<22x16xf32> -> vector<22x16xf32>
    %c0_9 = arith.constant 0 : index
    %c0_10 = arith.constant 0 : index
    %29 = vector.load %arg6[%c0_9, %c0_10] : memref<22x1xf32, #tpu.memory_space<vmem>>, vector<22x1xf32>
    %30 = vector.broadcast %29 : vector<22x1xf32> to vector<22x16xf32>
    %31 = arith.addf %28, %30 : vector<22x16xf32>
    %c0_11 = arith.constant 0 : index
    %c0_12 = arith.constant 0 : index
    %32 = vector.load %arg7[%c0_11, %c0_12] : memref<32x32xbf16, #tpu.memory_space<vmem>>, vector<32x32xbf16>
    %cst_13 = arith.constant dense<0.000000e+00> : vector<32x16xf32>
    %33 = tpu.matmul %32, %26, %cst_13 {dimension_numbers = #tpu.dot_dimension_numbers<[1], [0], [0], [1], [0, 0, 1, 1], [], []>} : vector<32x32xbf16>, vector<32x16xbf16>, vector<32x16xf32> -> vector<32x16xf32>
    %c0_14 = arith.constant 0 : index
    %c0_15 = arith.constant 0 : index
    %34 = vector.load %arg8[%c0_14, %c0_15] : memref<32x1xf32, #tpu.memory_space<vmem>>, vector<32x1xf32>
    %35 = vector.broadcast %34 : vector<32x1xf32> to vector<32x16xf32>
    %36 = arith.addf %33, %35 : vector<32x16xf32>
    %cst_16 = arith.constant 0.000000e+00 : f32
    %37 = vector.broadcast %cst_16 : f32 to vector<32x16xf32>
    %38 = arith.maximumf %36, %37 : vector<32x16xf32>
    %c0_17 = arith.constant 0 : index
    %c0_18 = arith.constant 0 : index
    %39 = vector.load %arg9[%c0_17, %c0_18] : memref<16x32xbf16, #tpu.memory_space<vmem>>, vector<16x32xbf16>
    %40 = arith.truncf %38 : vector<32x16xf32> to vector<32x16xbf16>
    %cst_19 = arith.constant dense<0.000000e+00> : vector<16x16xf32>
    %41 = tpu.matmul %39, %40, %cst_19 {dimension_numbers = #tpu.dot_dimension_numbers<[1], [0], [0], [1], [0, 0, 1, 1], [], []>} : vector<16x32xbf16>, vector<32x16xbf16>, vector<16x16xf32> -> vector<16x16xf32>
    %c0_20 = arith.constant 0 : index
    %c0_21 = arith.constant 0 : index
    %42 = vector.load %arg10[%c0_20, %c0_21] : memref<16x1xf32, #tpu.memory_space<vmem>>, vector<16x1xf32>
    %43 = vector.broadcast %42 : vector<16x1xf32> to vector<16x16xf32>
    %44 = arith.addf %41, %43 : vector<16x16xf32>
    %45 = tpu.concatenate %31, %44 in 0 : vector<22x16xf32>, vector<16x16xf32> -> vector<38x16xf32>
    %c0_22 = arith.constant 0 : index
    %c0_23 = arith.constant 0 : index
    %c0_24 = arith.constant 0 : index
    %46 = vector.load %arg11[%c0_22, %c0_23, %c0_24] : memref<1x38x16xf32, #tpu.memory_space<vmem>>, vector<1x38x16xf32>
    %47 = vector.shape_cast %46 : vector<1x38x16xf32> to vector<38x16xf32>
    %48 = vector.shape_cast %45 : vector<38x16xf32> to vector<1x38x16xf32>
    tpu.vector_store %arg11[%c0_22, %c0_23, %c0_24], %48 {strides = array<i32>} : memref<1x38x16xf32, #tpu.memory_space<vmem>>, vector<1x38x16xf32>,
    return
  }
  func.func @transform_0(%arg0: i32, %arg1: i32) -> (i32, i32, i32) {
    %c0_i32 = arith.constant 0 : i32
    %c0_i32_0 = arith.constant 0 : i32
    return %arg0, %c0_i32, %arg1 : i32, i32, i32
  }
  func.func @transform_1(%arg0: i32, %arg1: i32) -> (i32, i32) {
    %c0_i32 = arith.constant 0 : i32
    %c0_i32_0 = arith.constant 0 : i32
    %c0_i32_1 = arith.constant 0 : i32
    return %c0_i32, %c0_i32_0 : i32, i32
  }
  func.func @transform_2(%arg0: i32, %arg1: i32) -> (i32, i32) {
    %c0_i32 = arith.constant 0 : i32
    %c0_i32_0 = arith.constant 0 : i32
    %c0_i32_1 = arith.constant 0 : i32
    return %c0_i32, %c0_i32_0 : i32, i32
  }
  func.func @transform_3(%arg0: i32, %arg1: i32) -> (i32, i32) {
    %c0_i32 = arith.constant 0 : i32
    %c0_i32_0 = arith.constant 0 : i32
    %c0_i32_1 = arith.constant 0 : i32
    return %c0_i32, %c0_i32_0 : i32, i32
  }
  func.func @transform_4(%arg0: i32, %arg1: i32) -> (i32, i32) {
    %c0_i32 = arith.constant 0 : i32
    %c0_i32_0 = arith.constant 0 : i32
    %c0_i32_1 = arith.constant 0 : i32
    return %c0_i32, %c0_i32_0 : i32, i32
  }
  func.func @transform_5(%arg0: i32, %arg1: i32) -> (i32, i32) {
    %c0_i32 = arith.constant 0 : i32
    %c0_i32_0 = arith.constant 0 : i32
    %c0_i32_1 = arith.constant 0 : i32
    return %c0_i32, %c0_i32_0 : i32, i32
  }
  func.func @transform_6(%arg0: i32, %arg1: i32) -> (i32, i32) {
    %c0_i32 = arith.constant 0 : i32
    %c0_i32_0 = arith.constant 0 : i32
    %c0_i32_1 = arith.constant 0 : i32
    return %c0_i32, %c0_i32_0 : i32, i32
  }
  func.func @transform_7(%arg0: i32, %arg1: i32) -> (i32, i32) {
    %c0_i32 = arith.constant 0 : i32
    %c0_i32_0 = arith.constant 0 : i32
    %c0_i32_1 = arith.constant 0 : i32
    return %c0_i32, %c0_i32_0 : i32, i32
  }
  func.func @transform_8(%arg0: i32, %arg1: i32) -> (i32, i32) {
    %c0_i32 = arith.constant 0 : i32
    %c0_i32_0 = arith.constant 0 : i32
    %c0_i32_1 = arith.constant 0 : i32
    return %c0_i32, %c0_i32_0 : i32, i32
  }
  func.func @transform_9(%arg0: i32, %arg1: i32) -> (i32, i32, i32) {
    %c0_i32 = arith.constant 0 : i32
    %c0_i32_0 = arith.constant 0 : i32
    return %arg0, %c0_i32, %arg1 : i32, i32, i32
  }
}

module attributes {stable_mosaic.version = 11 : i64} {
  func.func @_teacher_kernel(%arg0: i32, %arg1: i32, %arg2: memref<1x3x16xf32, #tpu.memory_space<vmem>>, %arg3: memref<32x3xf32, #tpu.memory_space<vmem>>, %arg4: memref<32x1xf32, #tpu.memory_space<vmem>>, %arg5: memref<6x32xbf16, #tpu.memory_space<vmem>>, %arg6: memref<6x1xf32, #tpu.memory_space<vmem>>, %arg7: memref<1x6x16xf32, #tpu.memory_space<vmem>>) attributes {dimension_semantics = [#tpu.dimension_semantics<parallel>, #tpu.dimension_semantics<parallel>], iteration_bounds = array<i64: 2, 1>, scalar_prefetch = 0 : i64, scratch_operands = 0 : i64, tpu.core_type = #tpu.core_type<tc>, window_params = [{transform_indices = @transform_0, window_bounds = array<i64: 1, 3, 16>}, {pipeline_mode = #tpu.pipeline_mode<synchronous>, transform_indices = @transform_1, window_bounds = array<i64: 32, 3>}, {pipeline_mode = #tpu.pipeline_mode<synchronous>, transform_indices = @transform_2, window_bounds = array<i64: 32, 1>}, {pipeline_mode = #tpu.pipeline_mode<synchronous>, transform_indices = @transform_3, window_bounds = array<i64: 6, 32>}, {pipeline_mode = #tpu.pipeline_mode<synchronous>, transform_indices = @transform_4, window_bounds = array<i64: 6, 1>}, {transform_indices = @transform_5, window_bounds = array<i64: 1, 6, 16>}]} {
    %c0 = arith.constant 0 : index
    %c0_0 = arith.constant 0 : index
    %c0_1 = arith.constant 0 : index
    %0 = vector.load %arg2[%c0, %c0_0, %c0_1] : memref<1x3x16xf32, #tpu.memory_space<vmem>>, vector<1x3x16xf32>
    %1 = vector.shape_cast %0 : vector<1x3x16xf32> to vector<3x16xf32>
    %c0_2 = arith.constant 0 : index
    %c0_3 = arith.constant 0 : index
    %2 = vector.load %arg3[%c0_2, %c0_3] : memref<32x3xf32, #tpu.memory_space<vmem>>, vector<32x3xf32>
    %c0_4 = arith.constant 0 : index
    %c0_5 = arith.constant 0 : index
    %3 = vector.load %arg4[%c0_4, %c0_5] : memref<32x1xf32, #tpu.memory_space<vmem>>, vector<32x1xf32>
    %4 = vector.shape_cast %3 : vector<32x1xf32> to vector<32x1xf32>
    %5 = vector.broadcast %4 : vector<32x1xf32> to vector<32x16xf32>
    %6 = vector.extract_strided_slice %2 {offsets = [0, 0], sizes = [32, 1], strides = [1, 1]} : vector<32x3xf32> to vector<32x1xf32>
    %7 = vector.extract_strided_slice %1 {offsets = [0, 0], sizes = [1, 16], strides = [1, 1]} : vector<3x16xf32> to vector<1x16xf32>
    %8 = vector.broadcast %6 : vector<32x1xf32> to vector<32x16xf32>
    %9 = vector.broadcast %7 : vector<1x16xf32> to vector<32x16xf32>
    %10 = arith.mulf %8, %9 : vector<32x16xf32>
    %11 = arith.addf %5, %10 : vector<32x16xf32>
    %12 = vector.extract_strided_slice %2 {offsets = [0, 1], sizes = [32, 1], strides = [1, 1]} : vector<32x3xf32> to vector<32x1xf32>
    %13 = vector.extract_strided_slice %1 {offsets = [1, 0], sizes = [1, 16], strides = [1, 1]} : vector<3x16xf32> to vector<1x16xf32>
    %14 = vector.broadcast %12 : vector<32x1xf32> to vector<32x16xf32>
    %15 = vector.broadcast %13 : vector<1x16xf32> to vector<32x16xf32>
    %16 = arith.mulf %14, %15 : vector<32x16xf32>
    %17 = arith.addf %11, %16 : vector<32x16xf32>
    %18 = vector.extract_strided_slice %2 {offsets = [0, 2], sizes = [32, 1], strides = [1, 1]} : vector<32x3xf32> to vector<32x1xf32>
    %19 = vector.extract_strided_slice %1 {offsets = [2, 0], sizes = [1, 16], strides = [1, 1]} : vector<3x16xf32> to vector<1x16xf32>
    %20 = vector.broadcast %18 : vector<32x1xf32> to vector<32x16xf32>
    %21 = vector.broadcast %19 : vector<1x16xf32> to vector<32x16xf32>
    %22 = arith.mulf %20, %21 : vector<32x16xf32>
    %23 = arith.addf %17, %22 : vector<32x16xf32>
    %cst = arith.constant 0.000000e+00 : f32
    %24 = vector.broadcast %cst : f32 to vector<32x16xf32>
    %25 = arith.maximumf %23, %24 : vector<32x16xf32>
    %c0_6 = arith.constant 0 : index
    %c0_7 = arith.constant 0 : index
    %26 = vector.load %arg5[%c0_6, %c0_7] : memref<6x32xbf16, #tpu.memory_space<vmem>>, vector<6x32xbf16>
    %27 = arith.truncf %25 : vector<32x16xf32> to vector<32x16xbf16>
    %cst_8 = arith.constant dense<0.000000e+00> : vector<6x16xf32>
    %28 = tpu.matmul %26, %27, %cst_8 {dimension_numbers = #tpu.dot_dimension_numbers<[1], [0], [0], [1], [0, 0, 1, 1], [], []>} : vector<6x32xbf16>, vector<32x16xbf16>, vector<6x16xf32> -> vector<6x16xf32>
    %c0_9 = arith.constant 0 : index
    %c0_10 = arith.constant 0 : index
    %29 = vector.load %arg6[%c0_9, %c0_10] : memref<6x1xf32, #tpu.memory_space<vmem>>, vector<6x1xf32>
    %30 = vector.broadcast %29 : vector<6x1xf32> to vector<6x16xf32>
    %31 = arith.addf %28, %30 : vector<6x16xf32>
    %c0_11 = arith.constant 0 : index
    %c0_12 = arith.constant 0 : index
    %c0_13 = arith.constant 0 : index
    %32 = vector.load %arg7[%c0_11, %c0_12, %c0_13] : memref<1x6x16xf32, #tpu.memory_space<vmem>>, vector<1x6x16xf32>
    %33 = vector.shape_cast %32 : vector<1x6x16xf32> to vector<6x16xf32>
    %34 = vector.shape_cast %31 : vector<6x16xf32> to vector<1x6x16xf32>
    tpu.vector_store %arg7[%c0_11, %c0_12, %c0_13], %34 {strides = array<i32>} : memref<1x6x16xf32, #tpu.memory_space<vmem>>, vector<1x6x16xf32>,
    return
  }
  func.func @transform_0(%arg0: i32, %arg1: i32) -> (i32, i32, i32) {
    %c0_i32 = arith.constant 0 : i32
    %c0_i32_0 = arith.constant 0 : i32
    return %arg0, %c0_i32, %arg1 : i32, i32, i32
  }
  func.func @transform_1(%arg0: i32, %arg1: i32) -> (i32, i32) {
    %c0_i32 = arith.constant 0 : i32
    %c0_i32_0 = arith.constant 0 : i32
    %c0_i32_1 = arith.constant 0 : i32
    return %c0_i32, %c0_i32_0 : i32, i32
  }
  func.func @transform_2(%arg0: i32, %arg1: i32) -> (i32, i32) {
    %c0_i32 = arith.constant 0 : i32
    %c0_i32_0 = arith.constant 0 : i32
    %c0_i32_1 = arith.constant 0 : i32
    return %c0_i32, %c0_i32_0 : i32, i32
  }
  func.func @transform_3(%arg0: i32, %arg1: i32) -> (i32, i32) {
    %c0_i32 = arith.constant 0 : i32
    %c0_i32_0 = arith.constant 0 : i32
    %c0_i32_1 = arith.constant 0 : i32
    return %c0_i32, %c0_i32_0 : i32, i32
  }
  func.func @transform_4(%arg0: i32, %arg1: i32) -> (i32, i32) {
    %c0_i32 = arith.constant 0 : i32
    %c0_i32_0 = arith.constant 0 : i32
    %c0_i32_1 = arith.constant 0 : i32
    return %c0_i32, %c0_i32_0 : i32, i32
  }
  func.func @transform_5(%arg0: i32, %arg1: i32) -> (i32, i32, i32) {
    %c0_i32 = arith.constant 0 : i32
    %c0_i32_0 = arith.constant 0 : i32
    return %arg0, %c0_i32, %arg1 : i32, i32, i32
  }
}

module attributes {stable_mosaic.version = 11 : i64} {
  func.func @_upsample_kernel(%arg0: i32, %arg1: i32, %arg2: memref<1x6x4x4xf32, #tpu.memory_space<vmem>>, %arg3: memref<16x4xf32, #tpu.memory_space<vmem>>, %arg4: memref<4x16xf32, #tpu.memory_space<vmem>>, %arg5: memref<1x6x16x16xf32, #tpu.memory_space<vmem>>) attributes {dimension_semantics = [#tpu.dimension_semantics<parallel>, #tpu.dimension_semantics<parallel>], iteration_bounds = array<i64: 4, 1>, scalar_prefetch = 0 : i64, scratch_operands = 0 : i64, tpu.core_type = #tpu.core_type<tc>, window_params = [{transform_indices = @transform_0, window_bounds = array<i64: 1, 6, 4, 4>}, {transform_indices = @transform_1, window_bounds = array<i64: 16, 4>}, {pipeline_mode = #tpu.pipeline_mode<synchronous>, transform_indices = @transform_2, window_bounds = array<i64: 4, 16>}, {transform_indices = @transform_3, window_bounds = array<i64: 1, 6, 16, 16>}]} {
    %c0 = arith.constant 0 : index
    %c0_0 = arith.constant 0 : index
    %0 = vector.load %arg3[%c0, %c0_0] : memref<16x4xf32, #tpu.memory_space<vmem>>, vector<16x4xf32>
    %c0_1 = arith.constant 0 : index
    %c0_2 = arith.constant 0 : index
    %1 = vector.load %arg4[%c0_1, %c0_2] : memref<4x16xf32, #tpu.memory_space<vmem>>, vector<4x16xf32>
    %c0_3 = arith.constant 0 : index
    %c0_4 = arith.constant 0 : index
    %c0_5 = arith.constant 0 : index
    %c0_6 = arith.constant 0 : index
    %2 = vector.load %arg2[%c0_3, %c0_4, %c0_5, %c0_6] : memref<1x6x4x4xf32, #tpu.memory_space<vmem>>, vector<1x1x4x4xf32>
    %3 = vector.shape_cast %2 : vector<1x1x4x4xf32> to vector<4x4xf32>
    %cst = arith.constant dense<0.000000e+00> : vector<16x4xf32>
    %4 = tpu.matmul %0, %3, %cst {dimension_numbers = #tpu.dot_dimension_numbers<[1], [0], [0], [1], [0, 0, 1, 1], [], []>} : vector<16x4xf32>, vector<4x4xf32>, vector<16x4xf32> -> vector<16x4xf32>
    %cst_7 = arith.constant dense<0.000000e+00> : vector<16x16xf32>
    %5 = tpu.matmul %4, %1, %cst_7 {dimension_numbers = #tpu.dot_dimension_numbers<[1], [0], [0], [1], [0, 0, 1, 1], [], []>} : vector<16x4xf32>, vector<4x16xf32>, vector<16x16xf32> -> vector<16x16xf32>
    %c0_8 = arith.constant 0 : index
    %c0_9 = arith.constant 0 : index
    %c0_10 = arith.constant 0 : index
    %c0_11 = arith.constant 0 : index
    %6 = vector.load %arg5[%c0_8, %c0_9, %c0_10, %c0_11] : memref<1x6x16x16xf32, #tpu.memory_space<vmem>>, vector<1x1x16x16xf32>
    %7 = vector.shape_cast %6 : vector<1x1x16x16xf32> to vector<16x16xf32>
    %8 = vector.shape_cast %5 : vector<16x16xf32> to vector<1x1x16x16xf32>
    tpu.vector_store %arg5[%c0_8, %c0_9, %c0_10, %c0_11], %8 {strides = array<i32>} : memref<1x6x16x16xf32, #tpu.memory_space<vmem>>, vector<1x1x16x16xf32>,
    %c0_12 = arith.constant 0 : index
    %c1 = arith.constant 1 : index
    %c0_13 = arith.constant 0 : index
    %c0_14 = arith.constant 0 : index
    %9 = vector.load %arg2[%c0_12, %c1, %c0_13, %c0_14] : memref<1x6x4x4xf32, #tpu.memory_space<vmem>>, vector<1x1x4x4xf32>
    %10 = vector.shape_cast %9 : vector<1x1x4x4xf32> to vector<4x4xf32>
    %cst_15 = arith.constant dense<0.000000e+00> : vector<16x4xf32>
    %11 = tpu.matmul %0, %10, %cst_15 {dimension_numbers = #tpu.dot_dimension_numbers<[1], [0], [0], [1], [0, 0, 1, 1], [], []>} : vector<16x4xf32>, vector<4x4xf32>, vector<16x4xf32> -> vector<16x4xf32>
    %cst_16 = arith.constant dense<0.000000e+00> : vector<16x16xf32>
    %12 = tpu.matmul %11, %1, %cst_16 {dimension_numbers = #tpu.dot_dimension_numbers<[1], [0], [0], [1], [0, 0, 1, 1], [], []>} : vector<16x4xf32>, vector<4x16xf32>, vector<16x16xf32> -> vector<16x16xf32>
    %c0_17 = arith.constant 0 : index
    %c1_18 = arith.constant 1 : index
    %c0_19 = arith.constant 0 : index
    %c0_20 = arith.constant 0 : index
    %13 = vector.load %arg5[%c0_17, %c1_18, %c0_19, %c0_20] : memref<1x6x16x16xf32, #tpu.memory_space<vmem>>, vector<1x1x16x16xf32>
    %14 = vector.shape_cast %13 : vector<1x1x16x16xf32> to vector<16x16xf32>
    %15 = vector.shape_cast %12 : vector<16x16xf32> to vector<1x1x16x16xf32>
    tpu.vector_store %arg5[%c0_17, %c1_18, %c0_19, %c0_20], %15 {strides = array<i32>} : memref<1x6x16x16xf32, #tpu.memory_space<vmem>>, vector<1x1x16x16xf32>,
    %c0_21 = arith.constant 0 : index
    %c2 = arith.constant 2 : index
    %c0_22 = arith.constant 0 : index
    %c0_23 = arith.constant 0 : index
    %16 = vector.load %arg2[%c0_21, %c2, %c0_22, %c0_23] : memref<1x6x4x4xf32, #tpu.memory_space<vmem>>, vector<1x1x4x4xf32>
    %17 = vector.shape_cast %16 : vector<1x1x4x4xf32> to vector<4x4xf32>
    %cst_24 = arith.constant dense<0.000000e+00> : vector<16x4xf32>
    %18 = tpu.matmul %0, %17, %cst_24 {dimension_numbers = #tpu.dot_dimension_numbers<[1], [0], [0], [1], [0, 0, 1, 1], [], []>} : vector<16x4xf32>, vector<4x4xf32>, vector<16x4xf32> -> vector<16x4xf32>
    %cst_25 = arith.constant dense<0.000000e+00> : vector<16x16xf32>
    %19 = tpu.matmul %18, %1, %cst_25 {dimension_numbers = #tpu.dot_dimension_numbers<[1], [0], [0], [1], [0, 0, 1, 1], [], []>} : vector<16x4xf32>, vector<4x16xf32>, vector<16x16xf32> -> vector<16x16xf32>
    %c0_26 = arith.constant 0 : index
    %c2_27 = arith.constant 2 : index
    %c0_28 = arith.constant 0 : index
    %c0_29 = arith.constant 0 : index
    %20 = vector.load %arg5[%c0_26, %c2_27, %c0_28, %c0_29] : memref<1x6x16x16xf32, #tpu.memory_space<vmem>>, vector<1x1x16x16xf32>
    %21 = vector.shape_cast %20 : vector<1x1x16x16xf32> to vector<16x16xf32>
    %22 = vector.shape_cast %19 : vector<16x16xf32> to vector<1x1x16x16xf32>
    tpu.vector_store %arg5[%c0_26, %c2_27, %c0_28, %c0_29], %22 {strides = array<i32>} : memref<1x6x16x16xf32, #tpu.memory_space<vmem>>, vector<1x1x16x16xf32>,
    %c0_30 = arith.constant 0 : index
    %c3 = arith.constant 3 : index
    %c0_31 = arith.constant 0 : index
    %c0_32 = arith.constant 0 : index
    %23 = vector.load %arg2[%c0_30, %c3, %c0_31, %c0_32] : memref<1x6x4x4xf32, #tpu.memory_space<vmem>>, vector<1x1x4x4xf32>
    %24 = vector.shape_cast %23 : vector<1x1x4x4xf32> to vector<4x4xf32>
    %cst_33 = arith.constant dense<0.000000e+00> : vector<16x4xf32>
    %25 = tpu.matmul %0, %24, %cst_33 {dimension_numbers = #tpu.dot_dimension_numbers<[1], [0], [0], [1], [0, 0, 1, 1], [], []>} : vector<16x4xf32>, vector<4x4xf32>, vector<16x4xf32> -> vector<16x4xf32>
    %cst_34 = arith.constant dense<0.000000e+00> : vector<16x16xf32>
    %26 = tpu.matmul %25, %1, %cst_34 {dimension_numbers = #tpu.dot_dimension_numbers<[1], [0], [0], [1], [0, 0, 1, 1], [], []>} : vector<16x4xf32>, vector<4x16xf32>, vector<16x16xf32> -> vector<16x16xf32>
    %c0_35 = arith.constant 0 : index
    %c3_36 = arith.constant 3 : index
    %c0_37 = arith.constant 0 : index
    %c0_38 = arith.constant 0 : index
    %27 = vector.load %arg5[%c0_35, %c3_36, %c0_37, %c0_38] : memref<1x6x16x16xf32, #tpu.memory_space<vmem>>, vector<1x1x16x16xf32>
    %28 = vector.shape_cast %27 : vector<1x1x16x16xf32> to vector<16x16xf32>
    %29 = vector.shape_cast %26 : vector<16x16xf32> to vector<1x1x16x16xf32>
    tpu.vector_store %arg5[%c0_35, %c3_36, %c0_37, %c0_38], %29 {strides = array<i32>} : memref<1x6x16x16xf32, #tpu.memory_space<vmem>>, vector<1x1x16x16xf32>,
    %c0_39 = arith.constant 0 : index
    %c4 = arith.constant 4 : index
    %c0_40 = arith.constant 0 : index
    %c0_41 = arith.constant 0 : index
    %30 = vector.load %arg2[%c0_39, %c4, %c0_40, %c0_41] : memref<1x6x4x4xf32, #tpu.memory_space<vmem>>, vector<1x1x4x4xf32>
    %31 = vector.shape_cast %30 : vector<1x1x4x4xf32> to vector<4x4xf32>
    %cst_42 = arith.constant dense<0.000000e+00> : vector<16x4xf32>
    %32 = tpu.matmul %0, %31, %cst_42 {dimension_numbers = #tpu.dot_dimension_numbers<[1], [0], [0], [1], [0, 0, 1, 1], [], []>} : vector<16x4xf32>, vector<4x4xf32>, vector<16x4xf32> -> vector<16x4xf32>
    %cst_43 = arith.constant dense<0.000000e+00> : vector<16x16xf32>
    %33 = tpu.matmul %32, %1, %cst_43 {dimension_numbers = #tpu.dot_dimension_numbers<[1], [0], [0], [1], [0, 0, 1, 1], [], []>} : vector<16x4xf32>, vector<4x16xf32>, vector<16x16xf32> -> vector<16x16xf32>
    %c0_44 = arith.constant 0 : index
    %c4_45 = arith.constant 4 : index
    %c0_46 = arith.constant 0 : index
    %c0_47 = arith.constant 0 : index
    %34 = vector.load %arg5[%c0_44, %c4_45, %c0_46, %c0_47] : memref<1x6x16x16xf32, #tpu.memory_space<vmem>>, vector<1x1x16x16xf32>
    %35 = vector.shape_cast %34 : vector<1x1x16x16xf32> to vector<16x16xf32>
    %36 = vector.shape_cast %33 : vector<16x16xf32> to vector<1x1x16x16xf32>
    tpu.vector_store %arg5[%c0_44, %c4_45, %c0_46, %c0_47], %36 {strides = array<i32>} : memref<1x6x16x16xf32, #tpu.memory_space<vmem>>, vector<1x1x16x16xf32>,
    %c0_48 = arith.constant 0 : index
    %c5 = arith.constant 5 : index
    %c0_49 = arith.constant 0 : index
    %c0_50 = arith.constant 0 : index
    %37 = vector.load %arg2[%c0_48, %c5, %c0_49, %c0_50] : memref<1x6x4x4xf32, #tpu.memory_space<vmem>>, vector<1x1x4x4xf32>
    %38 = vector.shape_cast %37 : vector<1x1x4x4xf32> to vector<4x4xf32>
    %cst_51 = arith.constant dense<0.000000e+00> : vector<16x4xf32>
    %39 = tpu.matmul %0, %38, %cst_51 {dimension_numbers = #tpu.dot_dimension_numbers<[1], [0], [0], [1], [0, 0, 1, 1], [], []>} : vector<16x4xf32>, vector<4x4xf32>, vector<16x4xf32> -> vector<16x4xf32>
    %cst_52 = arith.constant dense<0.000000e+00> : vector<16x16xf32>
    %40 = tpu.matmul %39, %1, %cst_52 {dimension_numbers = #tpu.dot_dimension_numbers<[1], [0], [0], [1], [0, 0, 1, 1], [], []>} : vector<16x4xf32>, vector<4x16xf32>, vector<16x16xf32> -> vector<16x16xf32>
    %c0_53 = arith.constant 0 : index
    %c5_54 = arith.constant 5 : index
    %c0_55 = arith.constant 0 : index
    %c0_56 = arith.constant 0 : index
    %41 = vector.load %arg5[%c0_53, %c5_54, %c0_55, %c0_56] : memref<1x6x16x16xf32, #tpu.memory_space<vmem>>, vector<1x1x16x16xf32>
    %42 = vector.shape_cast %41 : vector<1x1x16x16xf32> to vector<16x16xf32>
    %43 = vector.shape_cast %40 : vector<16x16xf32> to vector<1x1x16x16xf32>
    tpu.vector_store %arg5[%c0_53, %c5_54, %c0_55, %c0_56], %43 {strides = array<i32>} : memref<1x6x16x16xf32, #tpu.memory_space<vmem>>, vector<1x1x16x16xf32>,
    return
  }
  func.func @transform_0(%arg0: i32, %arg1: i32) -> (i32, i32, i32, i32) {
    %c0_i32 = arith.constant 0 : i32
    %c0_i32_0 = arith.constant 0 : i32
    %c0_i32_1 = arith.constant 0 : i32
    %c0_i32_2 = arith.constant 0 : i32
    return %arg0, %c0_i32, %c0_i32_0, %c0_i32_1 : i32, i32, i32, i32
  }
  func.func @transform_1(%arg0: i32, %arg1: i32) -> (i32, i32) {
    %c0_i32 = arith.constant 0 : i32
    %c0_i32_0 = arith.constant 0 : i32
    return %arg1, %c0_i32 : i32, i32
  }
  func.func @transform_2(%arg0: i32, %arg1: i32) -> (i32, i32) {
    %c0_i32 = arith.constant 0 : i32
    %c0_i32_0 = arith.constant 0 : i32
    %c0_i32_1 = arith.constant 0 : i32
    return %c0_i32, %c0_i32_0 : i32, i32
  }
  func.func @transform_3(%arg0: i32, %arg1: i32) -> (i32, i32, i32, i32) {
    %c0_i32 = arith.constant 0 : i32
    %c0_i32_0 = arith.constant 0 : i32
    %c0_i32_1 = arith.constant 0 : i32
    return %arg0, %c0_i32, %arg1, %c0_i32_0 : i32, i32, i32, i32
  }
}

module attributes {stable_mosaic.version = 11 : i64} {
  func.func @_upsample_softmax_kernel(%arg0: i32, %arg1: i32, %arg2: memref<1x6x4x4xf32, #tpu.memory_space<vmem>>, %arg3: memref<16x4xf32, #tpu.memory_space<vmem>>, %arg4: memref<4x16xf32, #tpu.memory_space<vmem>>, %arg5: memref<1x6x16x16xf32, #tpu.memory_space<vmem>>, %arg6: memref<1x16x16xf32, #tpu.memory_space<vmem>>, %arg7: memref<1x16x16xi32, #tpu.memory_space<vmem>>) attributes {dimension_semantics = [#tpu.dimension_semantics<parallel>, #tpu.dimension_semantics<parallel>], iteration_bounds = array<i64: 2, 1>, scalar_prefetch = 0 : i64, scratch_operands = 0 : i64, tpu.core_type = #tpu.core_type<tc>, window_params = [{transform_indices = @transform_0, window_bounds = array<i64: 1, 6, 4, 4>}, {transform_indices = @transform_1, window_bounds = array<i64: 16, 4>}, {pipeline_mode = #tpu.pipeline_mode<synchronous>, transform_indices = @transform_2, window_bounds = array<i64: 4, 16>}, {transform_indices = @transform_3, window_bounds = array<i64: 1, 6, 16, 16>}, {transform_indices = @transform_4, window_bounds = array<i64: 1, 16, 16>}, {transform_indices = @transform_5, window_bounds = array<i64: 1, 16, 16>}]} {
    %c0 = arith.constant 0 : index
    %c0_0 = arith.constant 0 : index
    %0 = vector.load %arg3[%c0, %c0_0] : memref<16x4xf32, #tpu.memory_space<vmem>>, vector<16x4xf32>
    %c0_1 = arith.constant 0 : index
    %c0_2 = arith.constant 0 : index
    %1 = vector.load %arg4[%c0_1, %c0_2] : memref<4x16xf32, #tpu.memory_space<vmem>>, vector<4x16xf32>
    %c0_3 = arith.constant 0 : index
    %c0_4 = arith.constant 0 : index
    %c0_5 = arith.constant 0 : index
    %c0_6 = arith.constant 0 : index
    %2 = vector.load %arg2[%c0_3, %c0_4, %c0_5, %c0_6] : memref<1x6x4x4xf32, #tpu.memory_space<vmem>>, vector<1x1x4x4xf32>
    %3 = vector.shape_cast %2 : vector<1x1x4x4xf32> to vector<4x4xf32>
    %cst = arith.constant dense<0.000000e+00> : vector<16x4xf32>
    %4 = tpu.matmul %0, %3, %cst {dimension_numbers = #tpu.dot_dimension_numbers<[1], [0], [0], [1], [0, 0, 1, 1], [], []>} : vector<16x4xf32>, vector<4x4xf32>, vector<16x4xf32> -> vector<16x4xf32>
    %cst_7 = arith.constant dense<0.000000e+00> : vector<16x16xf32>
    %5 = tpu.matmul %4, %1, %cst_7 {dimension_numbers = #tpu.dot_dimension_numbers<[1], [0], [0], [1], [0, 0, 1, 1], [], []>} : vector<16x4xf32>, vector<4x16xf32>, vector<16x16xf32> -> vector<16x16xf32>
    %c0_8 = arith.constant 0 : index
    %c0_9 = arith.constant 0 : index
    %c0_10 = arith.constant 0 : index
    %c0_11 = arith.constant 0 : index
    %6 = vector.load %arg5[%c0_8, %c0_9, %c0_10, %c0_11] : memref<1x6x16x16xf32, #tpu.memory_space<vmem>>, vector<1x1x16x16xf32>
    %7 = vector.shape_cast %6 : vector<1x1x16x16xf32> to vector<16x16xf32>
    %8 = vector.shape_cast %5 : vector<16x16xf32> to vector<1x1x16x16xf32>
    tpu.vector_store %arg5[%c0_8, %c0_9, %c0_10, %c0_11], %8 {strides = array<i32>} : memref<1x6x16x16xf32, #tpu.memory_space<vmem>>, vector<1x1x16x16xf32>,
    %c0_12 = arith.constant 0 : index
    %c1 = arith.constant 1 : index
    %c0_13 = arith.constant 0 : index
    %c0_14 = arith.constant 0 : index
    %9 = vector.load %arg2[%c0_12, %c1, %c0_13, %c0_14] : memref<1x6x4x4xf32, #tpu.memory_space<vmem>>, vector<1x1x4x4xf32>
    %10 = vector.shape_cast %9 : vector<1x1x4x4xf32> to vector<4x4xf32>
    %cst_15 = arith.constant dense<0.000000e+00> : vector<16x4xf32>
    %11 = tpu.matmul %0, %10, %cst_15 {dimension_numbers = #tpu.dot_dimension_numbers<[1], [0], [0], [1], [0, 0, 1, 1], [], []>} : vector<16x4xf32>, vector<4x4xf32>, vector<16x4xf32> -> vector<16x4xf32>
    %cst_16 = arith.constant dense<0.000000e+00> : vector<16x16xf32>
    %12 = tpu.matmul %11, %1, %cst_16 {dimension_numbers = #tpu.dot_dimension_numbers<[1], [0], [0], [1], [0, 0, 1, 1], [], []>} : vector<16x4xf32>, vector<4x16xf32>, vector<16x16xf32> -> vector<16x16xf32>
    %c0_17 = arith.constant 0 : index
    %c1_18 = arith.constant 1 : index
    %c0_19 = arith.constant 0 : index
    %c0_20 = arith.constant 0 : index
    %13 = vector.load %arg5[%c0_17, %c1_18, %c0_19, %c0_20] : memref<1x6x16x16xf32, #tpu.memory_space<vmem>>, vector<1x1x16x16xf32>
    %14 = vector.shape_cast %13 : vector<1x1x16x16xf32> to vector<16x16xf32>
    %15 = vector.shape_cast %12 : vector<16x16xf32> to vector<1x1x16x16xf32>
    tpu.vector_store %arg5[%c0_17, %c1_18, %c0_19, %c0_20], %15 {strides = array<i32>} : memref<1x6x16x16xf32, #tpu.memory_space<vmem>>, vector<1x1x16x16xf32>,
    %c0_21 = arith.constant 0 : index
    %c2 = arith.constant 2 : index
    %c0_22 = arith.constant 0 : index
    %c0_23 = arith.constant 0 : index
    %16 = vector.load %arg2[%c0_21, %c2, %c0_22, %c0_23] : memref<1x6x4x4xf32, #tpu.memory_space<vmem>>, vector<1x1x4x4xf32>
    %17 = vector.shape_cast %16 : vector<1x1x4x4xf32> to vector<4x4xf32>
    %cst_24 = arith.constant dense<0.000000e+00> : vector<16x4xf32>
    %18 = tpu.matmul %0, %17, %cst_24 {dimension_numbers = #tpu.dot_dimension_numbers<[1], [0], [0], [1], [0, 0, 1, 1], [], []>} : vector<16x4xf32>, vector<4x4xf32>, vector<16x4xf32> -> vector<16x4xf32>
    %cst_25 = arith.constant dense<0.000000e+00> : vector<16x16xf32>
    %19 = tpu.matmul %18, %1, %cst_25 {dimension_numbers = #tpu.dot_dimension_numbers<[1], [0], [0], [1], [0, 0, 1, 1], [], []>} : vector<16x4xf32>, vector<4x16xf32>, vector<16x16xf32> -> vector<16x16xf32>
    %c0_26 = arith.constant 0 : index
    %c2_27 = arith.constant 2 : index
    %c0_28 = arith.constant 0 : index
    %c0_29 = arith.constant 0 : index
    %20 = vector.load %arg5[%c0_26, %c2_27, %c0_28, %c0_29] : memref<1x6x16x16xf32, #tpu.memory_space<vmem>>, vector<1x1x16x16xf32>
    %21 = vector.shape_cast %20 : vector<1x1x16x16xf32> to vector<16x16xf32>
    %22 = vector.shape_cast %19 : vector<16x16xf32> to vector<1x1x16x16xf32>
    tpu.vector_store %arg5[%c0_26, %c2_27, %c0_28, %c0_29], %22 {strides = array<i32>} : memref<1x6x16x16xf32, #tpu.memory_space<vmem>>, vector<1x1x16x16xf32>,
    %c0_30 = arith.constant 0 : index
    %c3 = arith.constant 3 : index
    %c0_31 = arith.constant 0 : index
    %c0_32 = arith.constant 0 : index
    %23 = vector.load %arg2[%c0_30, %c3, %c0_31, %c0_32] : memref<1x6x4x4xf32, #tpu.memory_space<vmem>>, vector<1x1x4x4xf32>
    %24 = vector.shape_cast %23 : vector<1x1x4x4xf32> to vector<4x4xf32>
    %cst_33 = arith.constant dense<0.000000e+00> : vector<16x4xf32>
    %25 = tpu.matmul %0, %24, %cst_33 {dimension_numbers = #tpu.dot_dimension_numbers<[1], [0], [0], [1], [0, 0, 1, 1], [], []>} : vector<16x4xf32>, vector<4x4xf32>, vector<16x4xf32> -> vector<16x4xf32>
    %cst_34 = arith.constant dense<0.000000e+00> : vector<16x16xf32>
    %26 = tpu.matmul %25, %1, %cst_34 {dimension_numbers = #tpu.dot_dimension_numbers<[1], [0], [0], [1], [0, 0, 1, 1], [], []>} : vector<16x4xf32>, vector<4x16xf32>, vector<16x16xf32> -> vector<16x16xf32>
    %c0_35 = arith.constant 0 : index
    %c3_36 = arith.constant 3 : index
    %c0_37 = arith.constant 0 : index
    %c0_38 = arith.constant 0 : index
    %27 = vector.load %arg5[%c0_35, %c3_36, %c0_37, %c0_38] : memref<1x6x16x16xf32, #tpu.memory_space<vmem>>, vector<1x1x16x16xf32>
    %28 = vector.shape_cast %27 : vector<1x1x16x16xf32> to vector<16x16xf32>
    %29 = vector.shape_cast %26 : vector<16x16xf32> to vector<1x1x16x16xf32>
    tpu.vector_store %arg5[%c0_35, %c3_36, %c0_37, %c0_38], %29 {strides = array<i32>} : memref<1x6x16x16xf32, #tpu.memory_space<vmem>>, vector<1x1x16x16xf32>,
    %c0_39 = arith.constant 0 : index
    %c4 = arith.constant 4 : index
    %c0_40 = arith.constant 0 : index
    %c0_41 = arith.constant 0 : index
    %30 = vector.load %arg2[%c0_39, %c4, %c0_40, %c0_41] : memref<1x6x4x4xf32, #tpu.memory_space<vmem>>, vector<1x1x4x4xf32>
    %31 = vector.shape_cast %30 : vector<1x1x4x4xf32> to vector<4x4xf32>
    %cst_42 = arith.constant dense<0.000000e+00> : vector<16x4xf32>
    %32 = tpu.matmul %0, %31, %cst_42 {dimension_numbers = #tpu.dot_dimension_numbers<[1], [0], [0], [1], [0, 0, 1, 1], [], []>} : vector<16x4xf32>, vector<4x4xf32>, vector<16x4xf32> -> vector<16x4xf32>
    %cst_43 = arith.constant dense<0.000000e+00> : vector<16x16xf32>
    %33 = tpu.matmul %32, %1, %cst_43 {dimension_numbers = #tpu.dot_dimension_numbers<[1], [0], [0], [1], [0, 0, 1, 1], [], []>} : vector<16x4xf32>, vector<4x16xf32>, vector<16x16xf32> -> vector<16x16xf32>
    %c0_44 = arith.constant 0 : index
    %c4_45 = arith.constant 4 : index
    %c0_46 = arith.constant 0 : index
    %c0_47 = arith.constant 0 : index
    %34 = vector.load %arg5[%c0_44, %c4_45, %c0_46, %c0_47] : memref<1x6x16x16xf32, #tpu.memory_space<vmem>>, vector<1x1x16x16xf32>
    %35 = vector.shape_cast %34 : vector<1x1x16x16xf32> to vector<16x16xf32>
    %36 = vector.shape_cast %33 : vector<16x16xf32> to vector<1x1x16x16xf32>
    tpu.vector_store %arg5[%c0_44, %c4_45, %c0_46, %c0_47], %36 {strides = array<i32>} : memref<1x6x16x16xf32, #tpu.memory_space<vmem>>, vector<1x1x16x16xf32>,
    %c0_48 = arith.constant 0 : index
    %c5 = arith.constant 5 : index
    %c0_49 = arith.constant 0 : index
    %c0_50 = arith.constant 0 : index
    %37 = vector.load %arg2[%c0_48, %c5, %c0_49, %c0_50] : memref<1x6x4x4xf32, #tpu.memory_space<vmem>>, vector<1x1x4x4xf32>
    %38 = vector.shape_cast %37 : vector<1x1x4x4xf32> to vector<4x4xf32>
    %cst_51 = arith.constant dense<0.000000e+00> : vector<16x4xf32>
    %39 = tpu.matmul %0, %38, %cst_51 {dimension_numbers = #tpu.dot_dimension_numbers<[1], [0], [0], [1], [0, 0, 1, 1], [], []>} : vector<16x4xf32>, vector<4x4xf32>, vector<16x4xf32> -> vector<16x4xf32>
    %cst_52 = arith.constant dense<0.000000e+00> : vector<16x16xf32>
    %40 = tpu.matmul %39, %1, %cst_52 {dimension_numbers = #tpu.dot_dimension_numbers<[1], [0], [0], [1], [0, 0, 1, 1], [], []>} : vector<16x4xf32>, vector<4x16xf32>, vector<16x16xf32> -> vector<16x16xf32>
    %c0_53 = arith.constant 0 : index
    %c5_54 = arith.constant 5 : index
    %c0_55 = arith.constant 0 : index
    %c0_56 = arith.constant 0 : index
    %41 = vector.load %arg5[%c0_53, %c5_54, %c0_55, %c0_56] : memref<1x6x16x16xf32, #tpu.memory_space<vmem>>, vector<1x1x16x16xf32>
    %42 = vector.shape_cast %41 : vector<1x1x16x16xf32> to vector<16x16xf32>
    %43 = vector.shape_cast %40 : vector<16x16xf32> to vector<1x1x16x16xf32>
    tpu.vector_store %arg5[%c0_53, %c5_54, %c0_55, %c0_56], %43 {strides = array<i32>} : memref<1x6x16x16xf32, #tpu.memory_space<vmem>>, vector<1x1x16x16xf32>,
    %44 = arith.maximumf %5, %12 : vector<16x16xf32>
    %45 = arith.maximumf %44, %19 : vector<16x16xf32>
    %46 = arith.maximumf %45, %26 : vector<16x16xf32>
    %47 = arith.maximumf %46, %33 : vector<16x16xf32>
    %48 = arith.maximumf %47, %40 : vector<16x16xf32>
    %cst_57 = arith.constant 0.000000e+00 : f32
    %49 = vector.broadcast %cst_57 : f32 to vector<16x16xf32>
    %c5_i32 = arith.constant 5 : i32
    %50 = vector.broadcast %c5_i32 : i32 to vector<16x16xi32>
    %51 = arith.subf %40, %48 : vector<16x16xf32>
    %52 = math.exp %51 : vector<16x16xf32>
    %53 = arith.addf %49, %52 : vector<16x16xf32>
    %54 = arith.cmpf oge, %40, %48 : vector<16x16xf32>
    %c5_i32_58 = arith.constant 5 : i32
    %55 = vector.broadcast %c5_i32_58 : i32 to vector<16x16xi32>
    %56 = arith.select %54, %55, %50 : vector<16x16xi1>, vector<16x16xi32>
    %57 = arith.subf %33, %48 : vector<16x16xf32>
    %58 = math.exp %57 : vector<16x16xf32>
    %59 = arith.addf %53, %58 : vector<16x16xf32>
    %60 = arith.cmpf oge, %33, %48 : vector<16x16xf32>
    %c4_i32 = arith.constant 4 : i32
    %61 = vector.broadcast %c4_i32 : i32 to vector<16x16xi32>
    %62 = arith.select %60, %61, %56 : vector<16x16xi1>, vector<16x16xi32>
    %63 = arith.subf %26, %48 : vector<16x16xf32>
    %64 = math.exp %63 : vector<16x16xf32>
    %65 = arith.addf %59, %64 : vector<16x16xf32>
    %66 = arith.cmpf oge, %26, %48 : vector<16x16xf32>
    %c3_i32 = arith.constant 3 : i32
    %67 = vector.broadcast %c3_i32 : i32 to vector<16x16xi32>
    %68 = arith.select %66, %67, %62 : vector<16x16xi1>, vector<16x16xi32>
    %69 = arith.subf %19, %48 : vector<16x16xf32>
    %70 = math.exp %69 : vector<16x16xf32>
    %71 = arith.addf %65, %70 : vector<16x16xf32>
    %72 = arith.cmpf oge, %19, %48 : vector<16x16xf32>
    %c2_i32 = arith.constant 2 : i32
    %73 = vector.broadcast %c2_i32 : i32 to vector<16x16xi32>
    %74 = arith.select %72, %73, %68 : vector<16x16xi1>, vector<16x16xi32>
    %75 = arith.subf %12, %48 : vector<16x16xf32>
    %76 = math.exp %75 : vector<16x16xf32>
    %77 = arith.addf %71, %76 : vector<16x16xf32>
    %78 = arith.cmpf oge, %12, %48 : vector<16x16xf32>
    %c1_i32 = arith.constant 1 : i32
    %79 = vector.broadcast %c1_i32 : i32 to vector<16x16xi32>
    %80 = arith.select %78, %79, %74 : vector<16x16xi1>, vector<16x16xi32>
    %81 = arith.subf %5, %48 : vector<16x16xf32>
    %82 = math.exp %81 : vector<16x16xf32>
    %83 = arith.addf %77, %82 : vector<16x16xf32>
    %84 = arith.cmpf oge, %5, %48 : vector<16x16xf32>
    %c0_i32 = arith.constant 0 : i32
    %85 = vector.broadcast %c0_i32 : i32 to vector<16x16xi32>
    %86 = arith.select %84, %85, %80 : vector<16x16xi1>, vector<16x16xi32>
    %87 = tpu.reciprocal %83 {approx = true} : vector<16x16xf32> -> vector<16x16xf32>
    %c0_59 = arith.constant 0 : index
    %c0_60 = arith.constant 0 : index
    %c0_61 = arith.constant 0 : index
    %88 = vector.load %arg6[%c0_59, %c0_60, %c0_61] : memref<1x16x16xf32, #tpu.memory_space<vmem>>, vector<1x16x16xf32>
    %89 = vector.shape_cast %88 : vector<1x16x16xf32> to vector<16x16xf32>
    %90 = vector.shape_cast %87 : vector<16x16xf32> to vector<1x16x16xf32>
    tpu.vector_store %arg6[%c0_59, %c0_60, %c0_61], %90 {strides = array<i32>} : memref<1x16x16xf32, #tpu.memory_space<vmem>>, vector<1x16x16xf32>,
    %c0_62 = arith.constant 0 : index
    %c0_63 = arith.constant 0 : index
    %c0_64 = arith.constant 0 : index
    %91 = vector.load %arg7[%c0_62, %c0_63, %c0_64] : memref<1x16x16xi32, #tpu.memory_space<vmem>>, vector<1x16x16xi32>
    %92 = vector.shape_cast %91 : vector<1x16x16xi32> to vector<16x16xi32>
    %93 = vector.shape_cast %86 : vector<16x16xi32> to vector<1x16x16xi32>
    tpu.vector_store %arg7[%c0_62, %c0_63, %c0_64], %93 {strides = array<i32>} : memref<1x16x16xi32, #tpu.memory_space<vmem>>, vector<1x16x16xi32>,
    return
  }
  func.func @transform_0(%arg0: i32, %arg1: i32) -> (i32, i32, i32, i32) {
    %c0_i32 = arith.constant 0 : i32
    %c0_i32_0 = arith.constant 0 : i32
    %c0_i32_1 = arith.constant 0 : i32
    %c0_i32_2 = arith.constant 0 : i32
    return %arg0, %c0_i32, %c0_i32_0, %c0_i32_1 : i32, i32, i32, i32
  }
  func.func @transform_1(%arg0: i32, %arg1: i32) -> (i32, i32) {
    %c0_i32 = arith.constant 0 : i32
    %c0_i32_0 = arith.constant 0 : i32
    return %arg1, %c0_i32 : i32, i32
  }
  func.func @transform_2(%arg0: i32, %arg1: i32) -> (i32, i32) {
    %c0_i32 = arith.constant 0 : i32
    %c0_i32_0 = arith.constant 0 : i32
    %c0_i32_1 = arith.constant 0 : i32
    return %c0_i32, %c0_i32_0 : i32, i32
  }
  func.func @transform_3(%arg0: i32, %arg1: i32) -> (i32, i32, i32, i32) {
    %c0_i32 = arith.constant 0 : i32
    %c0_i32_0 = arith.constant 0 : i32
    %c0_i32_1 = arith.constant 0 : i32
    return %arg0, %c0_i32, %arg1, %c0_i32_0 : i32, i32, i32, i32
  }
  func.func @transform_4(%arg0: i32, %arg1: i32) -> (i32, i32, i32) {
    %c0_i32 = arith.constant 0 : i32
    %c0_i32_0 = arith.constant 0 : i32
    return %arg0, %arg1, %c0_i32 : i32, i32, i32
  }
  func.func @transform_5(%arg0: i32, %arg1: i32) -> (i32, i32, i32) {
    %c0_i32 = arith.constant 0 : i32
    %c0_i32_0 = arith.constant 0 : i32
    return %arg0, %arg1, %c0_i32 : i32, i32, i32
  }
}

</mosaic_0001>

<bundles_post_ra>
// kernel: model_with_un_single_forward.6
= control target key start
LH: loop header
LB: loop body
LE: loop exit
PB: predicated region body
PF: predicated region fallthrough
CT: control target
= control target key end

     0   :  { %s1008_s30 = smov 0   ;;  %s1010_s10 = smov 0   ;;  %s1131_s0 = inlined_call_operand.vmem [shape: f32[4,3,16], index: 0, kind: input, shape index: {}]   ;;  %s1132_s1 = inlined_call_operand.vmem [shape: f32[32,3], index: 1, kind: input, shape index: {}]   ;;  %s1133_s2 = inlined_call_operand.vmem [shape: f32[32,1], index: 2, kind: input, shape index: {}]   ;;  %s1134_s3 = inlined_call_operand.vmem [shape: bf16[22,32], index: 3, kind: input, shape index: {}]   ;;  %s1135_s4 = inlined_call_operand.vmem [shape: f32[22,1], index: 4, kind: input, shape index: {}]   ;;  %s1136_s5 = inlined_call_operand.vmem [shape: bf16[32,32], index: 5, kind: input, shape index: {}]   ;;  %s1137_s6 = inlined_call_operand.vmem [shape: f32[32,1], index: 6, kind: input, shape index: {}]   ;;  %s1138_s7 = inlined_call_operand.vmem [shape: bf16[16,32], index: 7, kind: input, shape index: {}]   ;;  %s1139_s8 = inlined_call_operand.vmem [shape: f32[16,1], index: 8, kind: input, shape index: {}]   ;;  %s1140_s9 = inlined_call_operand.vmem [shape: f32[4,38,16], index: 9, kind: output, shape index: {}]  }
   0x1   :  { %s1012_s11 = smov 0  }
   0x2 LB: > { %s31_s12 = sadd.s32 1, %s947_s10  ;;  %p832_p0 = scmp.ge.s32.totalorder %s951_s11, 1  ;;  %s951_s11 = sphi %s1012_s11, %s19_s11   ;;  %s947_s10 = sphi %s1010_s10, %s1142_s10   ;;  %s943_s30 = sphi %s1008_s30, %s1141_s30  }
   0x3   : > { %p33_p1 = scmp.ge.s32.totalorder %s31_s12, 4  ;;  %p305_p2 = scmp.lt.s32.totalorder %s951_s11, 5 }
   0x5   : > { %s1144_s12 = smov (%p33_p1, %s31_s12), 0  ;;  %p306_p3 = pnand %p832_p0, %p305_p2 }
   0x6   : > { %v367_v0 = vld [vmem:[%s1133_s2] sm:$0xff] (!%p306_p3)  ;;  %v953_v2 = vmov (!%p306_p3), 0   ;;  %v368_v3 = vld [vmem:[%s1133_s2 + $0x8] sm:$0xff] (!%p306_p3)  ;;  %v366_v5 = vld [vmem:[%s1132_s1 + $0x18] sm:$0xff] (!%p306_p3)  ;;  %v954_v6 = vmov (!%p306_p3), 1   ;;  %v955_v9 = vmov (!%p306_p3), 2   ;;  %v411_v22 = vlaneseq (!%p306_p3) }
   0x7   : > { %309 = sbr.rel (%p306_p3) target bundleno = 634 (0x27a), region = 56  ;;  %v363_v1 = vld [vmem:[%s1132_s1] sm:$0xff] (!%p306_p3)  ;;  %913 = vset.pattern.permute.xlu1 (!%p306_p3), %v953_v2  ;;  %912 = vset.pattern.permute.xlu0 (!%p306_p3), %v953_v2  ;;  %v364_v4 = vld [vmem:[%s1132_s1 + $0x8] sm:$0xff] (!%p306_p3)  ;;  %v369_v7 = vld [vmem:[%s1133_s2 + $0x10] sm:$0xff] (!%p306_p3)  ;;  %vm514_vm0 = vcmask (!%p306_p3), 261120   ;;  %p346_p4 = scmp.lt.s32.totalorder (!%p306_p3), %s943_s30, 3 }
   0x8   : > { %373 = vperm.xlu1 (!%p306_p3), %913, %v367_v0   ;;  %393 = vperm.xlu0 (!%p306_p3), %912, %v363_v1   ;;  %v365_v8 = vld [vmem:[%s1132_s1 + $0x10] sm:$0xff] (!%p306_p3)  ;;  %v370_v10 = vld [vmem:[%s1133_s2 + $0x18] sm:$0xff] (!%p306_p3)  ;;  %v924_v11 = vld [vmem:[%s1134_s3] sm:$0xff] (!%p306_p3)   ;;  %v412_v25 = vshrl.u32 (!%p306_p3), %v411_v22, 7  ;;  %vm957_vm1 = vmmov (!%p306_p3), 0   ;;  %vm741_vm2 = vcmask (!%p306_p3), 130048  }
   0x9   : > { %v925_v12 = vld [vmem:[%s1136_s5] sm:$0xff] (!%p306_p3)   ;;  %862 = vmatprep.mubr.msk.bf16.mxu0 (!%p306_p3), %vm514_vm0, %v924_v11  ;;  %v574_v14 = vld [vmem:[%s1137_s6 + $0x8] sm:$0xff] (!%p306_p3)  ;;  %v575_v15 = vld [vmem:[%s1137_s6 + $0x10] sm:$0xff] (!%p306_p3)  ;;  %vm733_vm3 = vcmask (!%p306_p3), 1045504   ;;  %vm746_vm4 = vcmask (!%p306_p3), 128000  }
   0xa   : > { %870 = vmatprep.mubr.msk.bf16.mxu1 (!%p306_p3), %vm514_vm0, %v925_v12  ;;  %v573_v13 = vld [vmem:[%s1137_s6] sm:$0xff] (!%p306_p3)  ;;  %v671_v16 = vld [vmem:[%s1139_s8 + $0x8] sm:$0xff] (!%p306_p3)  ;;  %v576_v17 = vld [vmem:[%s1137_s6 + $0x18] sm:$0xff] (!%p306_p3)  ;;  %v413_v28 = vsub.s32 (!%p306_p3), 0, %v412_v25  ;;  %v441_v33 = vsub.s32 (!%p306_p3), 1, %v412_v25  ;;  %v469_v35 = vsub.s32 (!%p306_p3), 2, %v412_v25 }
   0xb   : > { %v488_v18 = vld [vmem:[%s1135_s4] sm:$0xff] (!%p306_p3)  ;;  %v490_v20 = vld [vmem:[%s1135_s4 + $0x10] sm:$0x3f] (!%p306_p3)  ;;  %v489_v21 = vld [vmem:[%s1135_s4 + $0x8] sm:$0xff] (!%p306_p3) }
   0xc   : > { %378 = vperm.xlu1 (!%p306_p3), %913, %v368_v3   ;;  %398 = vperm.xlu0 (!%p306_p3), %912, %v364_v4   ;;  %v670_v19 = vld [vmem:[%s1139_s8] sm:$0xff] (!%p306_p3) }
   0xe   : > { %s1146_s30 = smov (!%p346_p4, %s943_s30), 3 }
   0xf   : > { %s833_s17 = sshll.u32 %s1146_s30, 2  ;;  %s882_s25 = smul.u32 40, %s1146_s30 }
  0x10   : > { %914 = vset.pattern.permute.xlu1 %v954_v6  ;;  %408 = vperm.xlu0 %912, %v366_v5   ;;  %s352_s20 = scalar_lea.vmem %s1131_s0, %s833_s17 }
  0x11   : > { %428 = vperm.xlu1 %914, %v364_v4   ;;  %v362_v29 = vld [vmem:[%s352_s20] sm:$0x7]  ;;  %s1107_s28 = scalar_lea.vmem %s1140_s9, %s882_s25 }
  0x12   : > { %v414_v32 = vrot.slane %v362_v29, %v413_v28  ;;  %v442_v38 = vrot.slane %v362_v29, %v441_v33  ;;  %v470_v39 = vrot.slane %v362_v29, %v469_v35 }
  0x14   : > { %383 = vperm.xlu0 %912, %v369_v7  }
  0x15   : > { %915 = vset.pattern.permute.xlu1 %v953_v2 }
  0x16   : > { %403 = vperm.xlu1 %915, %v365_v8  }
  0x18   : > { %917 = vset.pattern.permute.xlu0 %v954_v6 }
  0x19   : > { %424 = vperm.xlu0 %917, %v363_v1  }
  0x1a   : > { %916 = vset.pattern.permute.xlu1 %v955_v9 }
  0x1b   : > { %452 = vperm.xlu1 %916, %v363_v1  }
  0x1d   : > { %432 = vperm.xlu0 %917, %v365_v8  }
  0x1f   : > { %456 = vperm.xlu1 %916, %v364_v4  }
  0x21   : > { %921 = vset.pattern.permute.xlu0 %v955_v9 }
  0x22   : > { %464 = vperm.xlu0 %921, %v366_v5  }
  0x23   : > { %918 = vset.pattern.permute.xlu1 %v953_v2 }
  0x24   : > { %388 = vperm.xlu1 %918, %v370_v10  }
  0x26   : > { %923 = vset.pattern.permute.xlu0 %v953_v2 }
  0x27   : > { %589 = vperm.xlu0 %923, %v575_v15   ;;  %v956_v15 = vmov 0.0  }
  0x28   : > { %919 = vset.pattern.permute.xlu1 %v954_v6 }
  0x29   : > { %436 = vperm.xlu1 %919, %v366_v5  }
  0x2b   : > { %679 = vperm.xlu0 %923, %v671_v16  }
  0x2d   : > { %920 = vset.pattern.permute.xlu1 %v955_v9 }
  0x2e   : > { %460 = vperm.xlu1 %920, %v365_v8  }
  0x2f   : > { %493 = vperm.xlu0 %923, %v488_v18  }
  0x32   : > { %922 = vset.pattern.permute.xlu1 %v953_v2 }
  0x33   : > { %579 = vperm.xlu1 %922, %v573_v13   ;;  %v926_v13 = vld [vmem:[%s1134_s3 + $0x8] ss:$0 sps:$4 sm:$0x77]  }
  0x37   : > { %584 = vperm.xlu1 %922, %v574_v14   ;;  %v927_v14 = vld [vmem:[%s1136_s5 + $0x8] sm:$0xff]  }
  0x3b   : > { %594 = vperm.xlu1 %922, %v576_v17  }
  0x3f   : > { %674 = vperm.xlu1 %922, %v670_v19  }
  0x43   : > { %503 = vperm.xlu1 %922, %v490_v20  }
  0x47   : > { %498 = vperm.xlu1 %922, %v489_v21  }
  0x87   : > { %v374_v23 = vpop.permute.xlu1 %373  ;;  %v394_v24 = vpop.permute.xlu0 %393 }
  0x88   : > { %v415_v36 = vmul.f32 %v414_v32, %v394_v24 }
  0x8a   : > { %v419_v41 = vadd.f32 %v415_v36, %v374_v23 }
  0x8b   : > { %v379_v26 = vpop.permute.xlu1 %378  ;;  %v399_v27 = vpop.permute.xlu0 %398 }
  0x8c   : > { %v416_v42 = vmul.f32 %v414_v32, %v399_v27 }
  0x8e   : > { %v420_v48 = vadd.f32 %v416_v42, %v379_v26 }
  0x8f   : > { %v409_v30 = vpop.permute.xlu0 %408 }
  0x90   : > { %v429_v31 = vpop.permute.xlu1 %428  ;;  %v418_v59 = vmul.f32 %v414_v32, %v409_v30 }
  0x91   : > { %v444_v45 = vmul.f32 %v442_v38, %v429_v31 }
  0x93   : > { %v384_v34 = vpop.permute.xlu0 %383  ;;  %v448_v50 = vadd.f32 %v444_v45, %v420_v48  ;;  %v928_v45 = vld [vmem:[%s1138_s7] sm:$0xff]  }
  0x95   : > { %v404_v37 = vpop.permute.xlu1 %403 }
  0x96   : > { %v417_v61 = vmul.f32 %v414_v32, %v404_v37 }
  0x98   : > { %v425_v40 = vpop.permute.xlu0 %424  ;;  %v421_v4 = vadd.f32 %v417_v61, %v384_v34 }
  0x99   : > { %v443_v43 = vmul.f32 %v442_v38, %v425_v40 }
  0x9a   : > { %v453_v44 = vpop.permute.xlu1 %452 }
  0x9b   : > { %v447_v46 = vadd.f32 %v443_v43, %v419_v41  ;;  %v471_v47 = vmul.f32 %v470_v39, %v453_v44 }
  0x9c   : > { %v433_v55 = vpop.permute.xlu0 %432 }
  0x9d   : > { %v475_v51 = vadd.f32 %v471_v47, %v447_v46  ;;  %v445_v1 = vmul.f32 %v442_v38, %v433_v55 }
  0x9e   : > { %v457_v49 = vpop.permute.xlu1 %456 }
  0x9f   : > { %v472_v52 = vmul.f32 %v470_v39, %v457_v49  ;;  %v479_v54 = vmax.f32 %v475_v51, 0.0  ;;  %v449_v6 = vadd.f32 %v445_v1, %v421_v4 }
  0xa1   : > { %v476_v53 = vadd.f32 %v472_v52, %v448_v50  ;;  %v465_v60 = vpop.permute.xlu0 %464 }
  0xa2   : > { %v474_v2 = vmul.f32 %v470_v39, %v465_v60 }
  0xa3   : > { %v480_v56 = vmax.f32 %v476_v53, 0.0  ;;  %v389_v57 = vpop.permute.xlu1 %388 }
  0xa4   : > { %v422_v63 = vadd.f32 %v418_v59, %v389_v57 }
  0xa5   : > { %v483_v58 = vpack.c.bf16 %v480_v56, %v479_v54 }
  0xa6   : > { %v590_v20 = vpop.permute.xlu0 %589 }
  0xa7   : > { %858 = vmatprep.subr.bf16.mxu0 %v483_v58  ;;  %866 = vmatprep.subr.bf16.mxu1 %v483_v58 }
  0xa8   : > { %v437_v62 = vpop.permute.xlu1 %436  ;;  %859 = vmatpush3.bf16.msra.mxu0 %v483_v58  ;;  %867 = vmatpush3.bf16.msra.mxu1 %v483_v58 }
  0xa9   : > { %v446_v0 = vmul.f32 %v442_v38, %v437_v62 }
  0xaa   : > { %v680_v22 = vpop.permute.xlu0 %679 }
  0xab   : > { %v450_v3 = vadd.f32 %v446_v0, %v422_v63 }
  0xad   : > { %v461_v5 = vpop.permute.xlu1 %460  ;;  %v478_v7 = vadd.f32 %v474_v2, %v450_v3 }
  0xae   : > { %v473_v8 = vmul.f32 %v470_v39, %v461_v5  ;;  %v494_v24 = vpop.permute.xlu0 %493 }
  0xaf   : > { %v482_v10 = vmax.f32 %v478_v7, 0.0 }
  0xb0   : > { %v477_v9 = vadd.f32 %v473_v8, %v449_v6 }
  0xb2   : > { %v481_v11 = vmax.f32 %v477_v9, 0.0  ;;  %v580_v16 = vpop.permute.xlu1 %579 }
  0xb4   : > { %v484_v12 = vpack.c.bf16 %v482_v10, %v481_v11 }
  0xb6   : > { %860 = vmatprep.subr.bf16.mxu0 %v484_v12  ;;  %868 = vmatprep.subr.bf16.mxu1 %v484_v12  ;;  %v585_v17 = vpop.permute.xlu1 %584 }
  0xb7   : > { %861 = vmatpush3.bf16.msra.mxu0 %v484_v12  ;;  %869 = vmatpush3.bf16.msra.mxu1 %v484_v12 }
  0xb8   : > { %874 = vmatprep.subr.bf16.mxu0 %v956_v15 }
  0xba   : > { %863 = vmatmul.mubr.msk.bf16.vlgmr.msra.gmra.mrb[0].mxu0 %vm514_vm0, %v926_v13  ;;  %871 = vmatmul.mubr.msk.bf16.vlgmr.msra.gmra.mrb[0].mxu1 %vm514_vm0, %v927_v14  ;;  %v595_v18 = vpop.permute.xlu1 %594 }
  0xbb   : > { %878 = vmatprep.mubr.msk.bf16.mxu0 %vm957_vm1, %v956_v15 }
  0xbe   : > { %v675_v19 = vpop.permute.xlu1 %674 }
  0xc2   : > { %v504_v21 = vpop.permute.xlu1 %503 }
  0xc6   : > { %v499_v23 = vpop.permute.xlu1 %498 }
 0x18d   : > { %v864_v25 = vpop.f32.mrb[0].mxu0  ;;  %v872_v26 = vpop.f32.mrb[0].mxu1 }
 0x18e   : > { %v656_v27 = vadd.f32 %v872_v26, %v590_v20  ;;  %v555_v28 = vpop.f32.mrb[1].mxu0  ;;  %v647_v29 = vpop.f32.mrb[1].mxu1  ;;  %v564_v50 = vadd.f32 %v864_v25, %v504_v21 }
 0x18f   : > { %v648_v30 = vadd.f32 %v647_v29, %v580_v16  ;;  %v865_v31 = vpop.f32.mrb[2].mxu0  ;;  %v873_v32 = vpop.f32.mrb[2].mxu1  ;;  %v556_v33 = vadd.f32 %v555_v28, %v494_v24 }
 0x190   : > { %v659_v34 = vadd.f32 %v873_v32, %v595_v18  ;;  %v558_v35 = vpop.f32.mrb[3].mxu0  ;;  %v650_v36 = vpop.f32.mrb[3].mxu1  ;;  %v664_v39 = vmax.f32 %v656_v27, 0.0 }
 0x191   : > { %v559_v37 = vadd.f32 %v558_v35, %v499_v23  ;;  %v651_v38 = vadd.f32 %v650_v36, %v585_v17  ;;  %742 = vst.msk [vmem:[%s1107_s28] sm:$0xff] %vm741_vm2, %v556_v33  ;;  %v662_v41 = vmax.f32 %v648_v30, 0.0 }
 0x192   : > { %v665_v40 = vmax.f32 %v659_v34, 0.0 }
 0x193   : > { %743 = vst.msk [vmem:[%s1107_s28 + $0x8] sm:$0xff] %vm741_vm2, %v559_v37  ;;  %v663_v42 = vmax.f32 %v651_v38, 0.0 }
 0x194   : > { %v669_v43 = vpack.c.bf16 %v665_v40, %v664_v39 }
 0x195   : > { %v668_v44 = vpack.c.bf16 %v663_v42, %v662_v41 }
 0x197   : > { %875 = vmatpush3.bf16.msra.mxu0 %v668_v44 }
 0x198   : > { %876 = vmatprep.subr.bf16.mxu0 %v956_v15 }
 0x19b   : > { %877 = vmatpush3.bf16.msra.mxu0 %v669_v43 }
 0x19e   : > { %879 = vmatmul.mubr.msk.bf16.vlgmr.msra.gmra.mrb[4].mxu0 %vm514_vm0, %v928_v45 }
 0x271   : > { %v724_v46 = vpop.f32.mrb[4].mxu0 }
 0x272   : > { %v725_v47 = vadd.f32 %v724_v46, %v675_v19  ;;  %v880_v48 = vpop.f32.mrb[5].mxu0 }
 0x273   : > { %v727_v49 = vpop.f32.mrb[6].mxu0 }
 0x274   : > { %v734_v51 = vrot.slane %v725_v47, 2  ;;  %v728_v52 = vadd.f32 %v727_v49, %v680_v22  ;;  %v881_v53 = vpop.f32.mrb[7].mxu0 }
 0x276   : > { %v740_v54 = vsel %vm733_vm3, %v564_v50, %v734_v51  ;;  %v735_v55 = vrot.slane %v728_v52, 2 }
 0x277   : > { %744 = vst.msk [vmem:[%s1107_s28 + $0x10] sm:$0xff] %vm741_vm2, %v740_v54 }
 0x278   : > { %v736_v56 = vsel %vm733_vm3, %v734_v51, %v735_v55  ;;  %747 = vst.msk [vmem:[%s1107_s28 + $0x20] sm:$0x3f] %vm746_vm4, %v735_v55 }
 0x279   : > { %745 = vst.msk [vmem:[%s1107_s28 + $0x18] sm:$0xff] %vm741_vm2, %v736_v56 }
 0x27a PF: > { %s19_s11 = sadd.s32 1, %s951_s11   ;;  %s1141_s30 = smov %s947_s10 }
 0x27b   : > { %p16_p5 = scmp.ge.s32.totalorder %s19_s11, 6   ;;  %s1142_s10 = smov %s1144_s12 }
 0x27d   :  { %18 = sbr.rel (!%p16_p5) target bundleno = 2 (0x2), region = 86 }

// kernel: model_with_un_single_forward.4
= control target key start
LH: loop header
LB: loop body
LE: loop exit
PB: predicated region body
PF: predicated region fallthrough
CT: control target
= control target key end

     0   :  { %s623_s18 = smov 0   ;;  %s625_s19 = smov 0   ;;  %s694_s0 = inlined_call_operand.vmem [shape: f32[2,3,16], index: 0, kind: input, shape index: {}]   ;;  %s695_s1 = inlined_call_operand.vmem [shape: f32[32,3], index: 1, kind: input, shape index: {}]   ;;  %s696_s2 = inlined_call_operand.vmem [shape: f32[32,1], index: 2, kind: input, shape index: {}]   ;;  %s697_s3 = inlined_call_operand.vmem [shape: bf16[6,32], index: 3, kind: input, shape index: {}]   ;;  %s698_s4 = inlined_call_operand.vmem [shape: f32[6,1], index: 4, kind: input, shape index: {}]   ;;  %s699_s5 = inlined_call_operand.vmem [shape: f32[2,6,16], index: 5, kind: output, shape index: {}]  }
   0x1   :  { %s627_s20 = smov 0  }
   0x2 LB: > { %s27_s21 = sadd.s32 1, %s582_s19  ;;  %p506_p0 = scmp.ge.s32.totalorder %s586_s20, 1  ;;  %s586_s20 = sphi %s627_s20, %s15_s20   ;;  %s582_s19 = sphi %s625_s19, %s701_s19   ;;  %s578_s18 = sphi %s623_s18, %s700_s18  }
   0x3   : > { %p29_p1 = scmp.ge.s32.totalorder %s27_s21, 2  ;;  %p205_p2 = scmp.lt.s32.totalorder %s586_s20, 3 }
   0x5   : > { %s703_s21 = smov (%p29_p1, %s27_s21), 0  ;;  %p206_p3 = pnand %p506_p0, %p205_p2 }
   0x6   : > { %v257_v0 = vld [vmem:[%s696_s2] sm:$0xff] (!%p206_p3)  ;;  %v588_v2 = vmov (!%p206_p3), 0   ;;  %v258_v3 = vld [vmem:[%s696_s2 + $0x8] sm:$0xff] (!%p206_p3)  ;;  %v256_v5 = vld [vmem:[%s695_s1 + $0x18] sm:$0xff] (!%p206_p3)  ;;  %v589_v6 = vmov (!%p206_p3), 1   ;;  %v590_v9 = vmov (!%p206_p3), 2   ;;  %v301_v13 = vlaneseq (!%p206_p3) }
   0x7   : > { %209 = sbr.rel (%p206_p3) target bundleno = 400 (0x190), region = 40  ;;  %v253_v1 = vld [vmem:[%s695_s1] sm:$0xff] (!%p206_p3)  ;;  %553 = vset.pattern.permute.xlu1 (!%p206_p3), %v588_v2  ;;  %552 = vset.pattern.permute.xlu0 (!%p206_p3), %v588_v2  ;;  %v254_v4 = vld [vmem:[%s695_s1 + $0x8] sm:$0xff] (!%p206_p3)  ;;  %v259_v7 = vld [vmem:[%s696_s2 + $0x10] sm:$0xff] (!%p206_p3)  ;;  %v591_v11 = vmov (!%p206_p3), 0.0   ;;  %vm592_vm0 = vmmov (!%p206_p3), 0  }
   0x8   : > { %263 = vperm.xlu1 (!%p206_p3), %553, %v257_v0   ;;  %283 = vperm.xlu0 (!%p206_p3), %552, %v253_v1   ;;  %v255_v8 = vld [vmem:[%s695_s1 + $0x10] sm:$0xff] (!%p206_p3)  ;;  %v260_v10 = vld [vmem:[%s696_s2 + $0x18] sm:$0xff] (!%p206_p3)  ;;  %v376_v12 = vld [vmem:[%s698_s4] sm:$0x3f] (!%p206_p3)  ;;  %p237_p4 = scmp.lt.s32.totalorder (!%p206_p3), %s578_s18, 1  ;;  %v302_v16 = vshrl.u32 (!%p206_p3), %v301_v13, 7 }
   0x9   : > { %515 = vmatprep.subr.bf16.mxu0 (!%p206_p3), %v591_v11  ;;  %519 = vmatprep.mubr.msk.bf16.mxu0 (!%p206_p3), %vm592_vm0, %v591_v11  ;;  %vm382_vm1 = vcmask (!%p206_p3), 261120   ;;  %vm426_vm2 = vcmask (!%p206_p3), 128000  }
   0xa   : > { %v303_v19 = vsub.s32 (!%p206_p3), 0, %v302_v16  ;;  %v331_v24 = vsub.s32 (!%p206_p3), 1, %v302_v16  ;;  %v359_v26 = vsub.s32 (!%p206_p3), 2, %v302_v16 }
   0xc   : > { %268 = vperm.xlu1 (!%p206_p3), %553, %v258_v3   ;;  %288 = vperm.xlu0 (!%p206_p3), %552, %v254_v4  }
   0xe   : > { %s705_s18 = smov (!%p237_p4, %s578_s18), 1 }
   0xf   : > { %s507_s15 = sshll.u32 %s705_s18, 2  ;;  %s508_s25 = sshll.u32 %s705_s18, 3 }
  0x10   : > { %554 = vset.pattern.permute.xlu1 %v589_v6  ;;  %298 = vperm.xlu0 %552, %v256_v5   ;;  %s243_s22 = scalar_lea.vmem %s694_s0, %s507_s15  ;;  %s250_s28 = scalar_lea.vmem %s699_s5, %s508_s25 }
  0x11   : > { %318 = vperm.xlu1 %554, %v254_v4   ;;  %v252_v20 = vld [vmem:[%s243_s22] sm:$0x7] }
  0x12   : > { %v304_v23 = vrot.slane %v252_v20, %v303_v19  ;;  %v332_v29 = vrot.slane %v252_v20, %v331_v24  ;;  %v360_v30 = vrot.slane %v252_v20, %v359_v26 }
  0x14   : > { %273 = vperm.xlu0 %552, %v259_v7  }
  0x15   : > { %555 = vset.pattern.permute.xlu1 %v588_v2 }
  0x16   : > { %293 = vperm.xlu1 %555, %v255_v8  }
  0x18   : > { %557 = vset.pattern.permute.xlu0 %v589_v6 }
  0x19   : > { %314 = vperm.xlu0 %557, %v253_v1  }
  0x1a   : > { %556 = vset.pattern.permute.xlu1 %v590_v9 }
  0x1b   : > { %342 = vperm.xlu1 %556, %v253_v1  }
  0x1d   : > { %322 = vperm.xlu0 %557, %v255_v8  }
  0x1f   : > { %346 = vperm.xlu1 %556, %v254_v4   ;;  %v373_v4 = vld [vmem:[%s697_s3] sm:$0x7] }
  0x21   : > { %561 = vset.pattern.permute.xlu0 %v590_v9 }
  0x22   : > { %354 = vperm.xlu0 %561, %v256_v5  }
  0x23   : > { %558 = vset.pattern.permute.xlu1 %v588_v2 }
  0x24   : > { %278 = vperm.xlu1 %558, %v260_v10  }
  0x26   : > { %563 = vset.pattern.permute.xlu0 %v588_v2 }
  0x28   : > { %559 = vset.pattern.permute.xlu1 %v589_v6 }
  0x29   : > { %326 = vperm.xlu1 %559, %v256_v5  }
  0x2d   : > { %560 = vset.pattern.permute.xlu1 %v590_v9 }
  0x2e   : > { %350 = vperm.xlu1 %560, %v255_v8  }
  0x32   : > { %562 = vset.pattern.permute.xlu1 %v588_v2 }
  0x33   : > { %379 = vperm.xlu1 %562, %v376_v12  }
  0x87   : > { %v264_v14 = vpop.permute.xlu1 %263  ;;  %v284_v15 = vpop.permute.xlu0 %283 }
  0x88   : > { %v305_v27 = vmul.f32 %v304_v23, %v284_v15 }
  0x8a   : > { %v309_v32 = vadd.f32 %v305_v27, %v264_v14 }
  0x8b   : > { %v269_v17 = vpop.permute.xlu1 %268  ;;  %v289_v18 = vpop.permute.xlu0 %288 }
  0x8c   : > { %v306_v33 = vmul.f32 %v304_v23, %v289_v18 }
  0x8e   : > { %v310_v39 = vadd.f32 %v306_v33, %v269_v17 }
  0x8f   : > { %v299_v21 = vpop.permute.xlu0 %298 }
  0x90   : > { %v319_v22 = vpop.permute.xlu1 %318  ;;  %v308_v50 = vmul.f32 %v304_v23, %v299_v21 }
  0x91   : > { %v334_v36 = vmul.f32 %v332_v29, %v319_v22 }
  0x93   : > { %v274_v25 = vpop.permute.xlu0 %273  ;;  %v338_v41 = vadd.f32 %v334_v36, %v310_v39 }
  0x95   : > { %v294_v28 = vpop.permute.xlu1 %293 }
  0x96   : > { %v307_v52 = vmul.f32 %v304_v23, %v294_v28 }
  0x98   : > { %v315_v31 = vpop.permute.xlu0 %314  ;;  %v311_v59 = vadd.f32 %v307_v52, %v274_v25 }
  0x99   : > { %v333_v34 = vmul.f32 %v332_v29, %v315_v31 }
  0x9a   : > { %v343_v35 = vpop.permute.xlu1 %342 }
  0x9b   : > { %v337_v37 = vadd.f32 %v333_v34, %v309_v32  ;;  %v361_v38 = vmul.f32 %v360_v30, %v343_v35 }
  0x9c   : > { %v323_v46 = vpop.permute.xlu0 %322 }
  0x9d   : > { %v365_v42 = vadd.f32 %v361_v38, %v337_v37  ;;  %v335_v56 = vmul.f32 %v332_v29, %v323_v46 }
  0x9e   : > { %v347_v40 = vpop.permute.xlu1 %346 }
  0x9f   : > { %v362_v43 = vmul.f32 %v360_v30, %v347_v40  ;;  %v369_v45 = vmax.f32 %v365_v42, 0.0  ;;  %v339_v61 = vadd.f32 %v335_v56, %v311_v59 }
  0xa1   : > { %v366_v44 = vadd.f32 %v362_v43, %v338_v41  ;;  %v355_v51 = vpop.permute.xlu0 %354 }
  0xa2   : > { %v364_v57 = vmul.f32 %v360_v30, %v355_v51 }
  0xa3   : > { %v370_v47 = vmax.f32 %v366_v44, 0.0  ;;  %v279_v48 = vpop.permute.xlu1 %278 }
  0xa4   : > { %v312_v54 = vadd.f32 %v308_v50, %v279_v48 }
  0xa5   : > { %v374_v49 = vpack.c.bf16 %v370_v47, %v369_v45 }
  0xa7   : > { %516 = vmatpush3.bf16.msra.mxu0 %v374_v49 }
  0xa8   : > { %v327_v53 = vpop.permute.xlu1 %326  ;;  %517 = vmatprep.subr.bf16.mxu0 %v591_v11 }
  0xa9   : > { %v336_v55 = vmul.f32 %v332_v29, %v327_v53 }
  0xab   : > { %v340_v58 = vadd.f32 %v336_v55, %v312_v54 }
  0xad   : > { %v351_v60 = vpop.permute.xlu1 %350  ;;  %v368_v62 = vadd.f32 %v364_v57, %v340_v58 }
  0xae   : > { %v363_v63 = vmul.f32 %v360_v30, %v351_v60 }
  0xaf   : > { %v372_v1 = vmax.f32 %v368_v62, 0.0 }
  0xb0   : > { %v367_v0 = vadd.f32 %v363_v63, %v339_v61 }
  0xb2   : > { %v371_v2 = vmax.f32 %v367_v0, 0.0  ;;  %v380_v5 = vpop.permute.xlu1 %379 }
  0xb4   : > { %v375_v3 = vpack.c.bf16 %v372_v1, %v371_v2 }
  0xb6   : > { %518 = vmatpush3.bf16.msra.mxu0 %v375_v3 }
  0xb9   : > { %520 = vmatmul.mubr.msk.bf16.vlgmr.msra.gmra.mrb[0].mxu0 %vm382_vm1, %v373_v4 }
 0x18c   : > { %v420_v6 = vpop.f32.mrb[0].mxu0 }
 0x18d   : > { %v421_v7 = vadd.f32 %v420_v6, %v380_v5  ;;  %v521_v8 = vpop.f32.mrb[1].mxu0 }
 0x18e   : > { %v423_v9 = vpop.f32.mrb[2].mxu0 }
 0x18f   : > { %427 = vst.msk [vmem:[%s250_s28] sm:$0x3f] %vm426_vm2, %v421_v7  ;;  %v522_v10 = vpop.f32.mrb[3].mxu0 }
 0x190 PF: > { %s15_s20 = sadd.s32 1, %s586_s20   ;;  %s700_s18 = smov %s582_s19 }
 0x191   : > { %p12_p5 = scmp.ge.s32.totalorder %s15_s20, 4   ;;  %s701_s19 = smov %s703_s21 }
 0x193   :  { %14 = sbr.rel (!%p12_p5) target bundleno = 2 (0x2), region = 70 }

// kernel: model_with_un_single_forward.7
= control target key start
LH: loop header
LB: loop body
LE: loop exit
PB: predicated region body
PF: predicated region fallthrough
CT: control target
= control target key end

     0   :  { %s1536_s12 = smov 0   ;;  %s1538_s13 = smov 0   ;;  %s1642_s0 = inlined_call_operand.vmem [shape: f32[4,6,4,4], index: 0, kind: input, shape index: {}]   ;;  %s1643_s1 = inlined_call_operand.vmem [shape: f32[16,4], index: 1, kind: input, shape index: {}]   ;;  %s1644_s2 = inlined_call_operand.vmem [shape: f32[4,16], index: 2, kind: input, shape index: {}]   ;;  %s1645_s3 = inlined_call_operand.vmem [shape: f32[4,6,16,16], index: 3, kind: output, shape index: {}]  }
   0x1   :  { %s1540_s14 = smov 0  }
   0x2 LB: > { %s25_s15 = sadd.s32 1, %s1510_s13  ;;  %p1314_p0 = scmp.ge.s32.totalorder %s1514_s14, 1  ;;  %s1514_s14 = sphi %s1540_s14, %s13_s14   ;;  %s1510_s13 = sphi %s1538_s13, %s1647_s13   ;;  %s1506_s12 = sphi %s1536_s12, %s1646_s12  }
   0x3   : > { %p27_p1 = scmp.ge.s32.totalorder %s25_s15, 4  ;;  %p162_p2 = scmp.lt.s32.totalorder %s1514_s14, 5 }
   0x5   : > { %s1649_s15 = smov (%p27_p1, %s25_s15), 0  ;;  %p163_p3 = pnand %p1314_p0, %p162_p2 }
   0x6   : > { %p195_p4 = scmp.lt.s32.totalorder (!%p163_p3), %s1506_s12, 3  ;;  %v216_v0 = vld [vmem:[%s1643_s1] sm:$0xff] (!%p163_p3)  ;;  %vm220_vm0 = vcmask (!%p163_p3), 31744   ;;  %vm227_vm1 = vcmask (!%p163_p3), 1043456   ;;  %v217_v2 = vld [vmem:[%s1643_s1 + $0x8] sm:$0xff] (!%p163_p3)  ;;  %vm390_vm2 = vcmask (!%p163_p3), 130048  }
   0x7   : > { %166 = sbr.rel (%p163_p3) target bundleno = 469 (0x1d5), region = 32  ;;  %1408 = vmatprep.mubr.msk.f32.mxu0 (!%p163_p3), %vm220_vm0, %v216_v0  ;;  %v218_v8 = vld [vmem:[%s1644_s2] sm:$0xf] (!%p163_p3) }
   0x8   : > { %1411 = vmatprep.subr.msk.mxu1 (!%p163_p3), %vm227_vm1, %v218_v8 }
   0x9   : > { %1412 = vmatpush3.msk.msra.mxu1 (!%p163_p3), %vm227_vm1, %v218_v8 }
   0xa   : > { %1421 = vmatprep.subr.msk.mxu1 (!%p163_p3), %vm227_vm1, %v218_v8 }
   0xe   : > { %s1651_s12 = smov (!%p195_p4, %s1506_s12), 3 }
   0xf   : > { %s1466_s18 = smul.u32 24, %s1651_s12 }
  0x10   : > { %s1467_s26 = smul.u32 96, %s1651_s12 }
  0x11   : > { %s199_s21 = scalar_lea.vmem %s1642_s0, %s1466_s18 }
  0x12   : > { %v219_v1 = vld [vmem:[%s199_s21] sm:$0xf]  ;;  %v1323_v3 = vld [vmem:[%s199_s21 + $0x4] sm:$0xf]  ;;  %v1332_v4 = vld [vmem:[%s199_s21 + $0x8] sm:$0xf]  ;;  %s214_s29 = scalar_lea.vmem %s1645_s3, %s1467_s26 }
  0x13   : > { %1406 = vmatprep.subr.msk.mxu0 %vm227_vm1, %v219_v1  ;;  %v1341_v5 = vld [vmem:[%s199_s21 + $0xc] sm:$0xf]  ;;  %v1350_v6 = vld [vmem:[%s199_s21 + $0x10] sm:$0xf]  ;;  %v1359_v7 = vld [vmem:[%s199_s21 + $0x14] sm:$0xf] }
  0x14   : > { %1407 = vmatpush3.msk.msra.mxu0 %vm227_vm1, %v219_v1 }
  0x15   : > { %1409 = vmatmul.mubr.msk.f32.vlgmr.msra.gmra.mrb[0].mxu0 %vm220_vm0, %v217_v2  ;;  %1416 = vmatprep.subr.msk.mxu0 %vm227_vm1, %v1323_v3 }
  0x16   : > { %1417 = vmatpush3.msk.msra.mxu0 %vm227_vm1, %v1323_v3  ;;  %1418 = vmatprep.mubr.msk.f32.mxu0 %vm220_vm0, %v216_v0 }
  0x17   : > { %1426 = vmatprep.subr.msk.mxu0 %vm227_vm1, %v1332_v4 }
  0x19   : > { %1419 = vmatmul.mubr.msk.f32.vlgmr.msra.gmra.mrb[2].mxu0 %vm220_vm0, %v217_v2 }
  0x1a   : > { %1427 = vmatpush3.msk.msra.mxu0 %vm227_vm1, %v1332_v4  ;;  %1428 = vmatprep.mubr.msk.f32.mxu0 %vm220_vm0, %v216_v0 }
  0x1b   : > { %1436 = vmatprep.subr.msk.mxu0 %vm227_vm1, %v1341_v5 }
  0x1d   : > { %1429 = vmatmul.mubr.msk.f32.vlgmr.msra.gmra.mrb[4].mxu0 %vm220_vm0, %v217_v2 }
  0x1e   : > { %1437 = vmatpush3.msk.msra.mxu0 %vm227_vm1, %v1341_v5  ;;  %1438 = vmatprep.mubr.msk.f32.mxu0 %vm220_vm0, %v216_v0 }
  0x1f   : > { %1446 = vmatprep.subr.msk.mxu0 %vm227_vm1, %v1350_v6 }
  0x21   : > { %1439 = vmatmul.mubr.msk.f32.vlgmr.msra.gmra.mrb[6].mxu0 %vm220_vm0, %v217_v2 }
  0x22   : > { %1447 = vmatpush3.msk.msra.mxu0 %vm227_vm1, %v1350_v6  ;;  %1448 = vmatprep.mubr.msk.f32.mxu0 %vm220_vm0, %v216_v0 }
  0x23   : > { %1456 = vmatprep.subr.msk.mxu0 %vm227_vm1, %v1359_v7 }
  0x25   : > { %1449 = vmatmul.mubr.msk.f32.vlgmr.msra.gmra.mrb[8].mxu0 %vm220_vm0, %v217_v2 }
  0x26   : > { %1457 = vmatpush3.msk.msra.mxu0 %vm227_vm1, %v1359_v7  ;;  %1458 = vmatprep.mubr.msk.f32.mxu0 %vm220_vm0, %v216_v0 }
  0x29   : > { %1459 = vmatmul.mubr.msk.f32.vlgmr.msra.gmra.mrb[10].mxu0 %vm220_vm0, %v217_v2 }
  0xe8   : > { %v1410_v9 = vpop.f32.mrb[0].mxu0 }
  0xe9   : > { %v297_v10 = vpop.f32.mrb[1].mxu0 }
  0xea   : > { %1413 = vmatprep.mubr.msk.f32.mxu1 %vm220_vm0, %v297_v10 }
  0xeb   : > { %1414 = vmatmul.mubr.msk.f32.vlgmr.msra.gmra.mrb[0].mxu1 %vm220_vm0, %v1410_v9 }
  0xec   : > { %v1420_v11 = vpop.f32.mrb[2].mxu0  ;;  %1422 = vmatpush3.msk.msra.mxu1 %vm227_vm1, %v218_v8 }
  0xed   : > { %v464_v12 = vpop.f32.mrb[3].mxu0  ;;  %1431 = vmatprep.subr.msk.mxu1 %vm227_vm1, %v218_v8 }
  0xee   : > { %1423 = vmatprep.mubr.msk.f32.mxu1 %vm220_vm0, %v464_v12 }
  0xef   : > { %1424 = vmatmul.mubr.msk.f32.vlgmr.msra.gmra.mrb[2].mxu1 %vm220_vm0, %v1420_v11 }
  0xf0   : > { %v1430_v13 = vpop.f32.mrb[4].mxu0  ;;  %1432 = vmatpush3.msk.msra.mxu1 %vm227_vm1, %v218_v8 }
  0xf1   : > { %v628_v14 = vpop.f32.mrb[5].mxu0  ;;  %1441 = vmatprep.subr.msk.mxu1 %vm227_vm1, %v218_v8 }
  0xf2   : > { %1433 = vmatprep.mubr.msk.f32.mxu1 %vm220_vm0, %v628_v14 }
  0xf3   : > { %1434 = vmatmul.mubr.msk.f32.vlgmr.msra.gmra.mrb[4].mxu1 %vm220_vm0, %v1430_v13 }
  0xf4   : > { %v1440_v15 = vpop.f32.mrb[6].mxu0  ;;  %1442 = vmatpush3.msk.msra.mxu1 %vm227_vm1, %v218_v8 }
  0xf5   : > { %v792_v16 = vpop.f32.mrb[7].mxu0  ;;  %1451 = vmatprep.subr.msk.mxu1 %vm227_vm1, %v218_v8 }
  0xf6   : > { %1443 = vmatprep.mubr.msk.f32.mxu1 %vm220_vm0, %v792_v16 }
  0xf7   : > { %1444 = vmatmul.mubr.msk.f32.vlgmr.msra.gmra.mrb[6].mxu1 %vm220_vm0, %v1440_v15 }
  0xf8   : > { %v1450_v17 = vpop.f32.mrb[8].mxu0  ;;  %1452 = vmatpush3.msk.msra.mxu1 %vm227_vm1, %v218_v8 }
  0xf9   : > { %v956_v18 = vpop.f32.mrb[9].mxu0  ;;  %1461 = vmatprep.subr.msk.mxu1 %vm227_vm1, %v218_v8 }
  0xfa   : > { %1453 = vmatprep.mubr.msk.f32.mxu1 %vm220_vm0, %v956_v18 }
  0xfb   : > { %1454 = vmatmul.mubr.msk.f32.vlgmr.msra.gmra.mrb[8].mxu1 %vm220_vm0, %v1450_v17 }
  0xfc   : > { %v1460_v19 = vpop.f32.mrb[10].mxu0  ;;  %1462 = vmatpush3.msk.msra.mxu1 %vm227_vm1, %v218_v8 }
  0xfd   : > { %v1120_v20 = vpop.f32.mrb[11].mxu0 }
  0xfe   : > { %1463 = vmatprep.mubr.msk.f32.mxu1 %vm220_vm0, %v1120_v20 }
  0xff   : > { %1464 = vmatmul.mubr.msk.f32.vlgmr.msra.gmra.mrb[10].mxu1 %vm220_vm0, %v1460_v19 }
 0x1be   : > { %v1415_v21 = vpop.f32.mrb[0].mxu1 }
 0x1bf   : > { %392 = vst.msk [vmem:[%s214_s29 + $0x8] sm:$0xff] %vm390_vm2, %v1415_v21  ;;  %v381_v22 = vpop.f32.mrb[1].mxu1 }
 0x1c0   : > { %391 = vst.msk [vmem:[%s214_s29] sm:$0xff] %vm390_vm2, %v381_v22 }
 0x1c2   : > { %v1425_v23 = vpop.f32.mrb[2].mxu1 }
 0x1c3   : > { %1331 = vst.msk [vmem:[%s214_s29 + $0x18] sm:$0xff] %vm390_vm2, %v1425_v23  ;;  %v545_v24 = vpop.f32.mrb[3].mxu1 }
 0x1c4   : > { %1330 = vst.msk [vmem:[%s214_s29 + $0x10] sm:$0xff] %vm390_vm2, %v545_v24 }
 0x1c6   : > { %v1435_v25 = vpop.f32.mrb[4].mxu1 }
 0x1c7   : > { %1340 = vst.msk [vmem:[%s214_s29 + $0x28] sm:$0xff] %vm390_vm2, %v1435_v25  ;;  %v709_v26 = vpop.f32.mrb[5].mxu1 }
 0x1c8   : > { %1339 = vst.msk [vmem:[%s214_s29 + $0x20] sm:$0xff] %vm390_vm2, %v709_v26 }
 0x1ca   : > { %v1445_v27 = vpop.f32.mrb[6].mxu1 }
 0x1cb   : > { %1349 = vst.msk [vmem:[%s214_s29 + $0x38] sm:$0xff] %vm390_vm2, %v1445_v27  ;;  %v873_v28 = vpop.f32.mrb[7].mxu1 }
 0x1cc   : > { %1348 = vst.msk [vmem:[%s214_s29 + $0x30] sm:$0xff] %vm390_vm2, %v873_v28 }
 0x1ce   : > { %v1455_v29 = vpop.f32.mrb[8].mxu1 }
 0x1cf   : > { %1358 = vst.msk [vmem:[%s214_s29 + $0x48] sm:$0xff] %vm390_vm2, %v1455_v29  ;;  %v1037_v30 = vpop.f32.mrb[9].mxu1 }
 0x1d0   : > { %1357 = vst.msk [vmem:[%s214_s29 + $0x40] sm:$0xff] %vm390_vm2, %v1037_v30 }
 0x1d2   : > { %v1465_v31 = vpop.f32.mrb[10].mxu1 }
 0x1d3   : > { %1367 = vst.msk [vmem:[%s214_s29 + $0x58] sm:$0xff] %vm390_vm2, %v1465_v31  ;;  %v1201_v32 = vpop.f32.mrb[11].mxu1 }
 0x1d4   : > { %1366 = vst.msk [vmem:[%s214_s29 + $0x50] sm:$0xff] %vm390_vm2, %v1201_v32 }
 0x1d5 PF: > { %s13_s14 = sadd.s32 1, %s1514_s14   ;;  %s1646_s12 = smov %s1510_s13 }
 0x1d6   : > { %p10_p5 = scmp.ge.s32.totalorder %s13_s14, 6   ;;  %s1647_s13 = smov %s1649_s15 }
 0x1d8   :  { %12 = sbr.rel (!%p10_p5) target bundleno = 2 (0x2), region = 75 }

// kernel: model_with_un_single_forward.5
= control target key start
LH: loop header
LB: loop body
LE: loop exit
PB: predicated region body
PF: predicated region fallthrough
CT: control target
= control target key end

     0   :  { %11 = vsyncpa [#allocation3], 0  ;;  %s2407_s0 = inlined_call_operand.vmem [shape: f32[2,6,4,4], index: 0, kind: input, shape index: {}]   ;;  %s2408_s1 = inlined_call_operand.vmem [shape: f32[16,4], index: 1, kind: input, shape index: {}]   ;;  %s2409_s2 = inlined_call_operand.vmem [shape: f32[4,16], index: 2, kind: input, shape index: {}]   ;;  %s2410_s3 = inlined_call_operand.hbm [shape: f32[2,6,16,16], index: 3, kind: output, shape index: {0}]   ;;  %s2411_s4 = inlined_call_operand.hbm [shape: f32[2,16,16], index: 4, kind: output, shape index: {1}]   ;;  %s2412_s5 = inlined_call_operand.hbm [shape: s32[2,16,16], index: 5, kind: output, shape index: {2}]  }
   0x1   :  { %13 = vsyncpa [#allocation3 + $0x1], 0 }
   0x2   :  { %14 = vsyncpa [#allocation5], 0 }
   0x3   :  { %16 = vsyncpa [#allocation5 + $0x1], 0  ;;  %s2024_s18 = smov 0   ;;  %s2026_s19 = smov 0  }
   0x4   :  { %s2028_s20 = smov 0   ;;  %s2030_s21 = smov 0  }
   0x5   :  { %s2032_s22 = smov 0   ;;  %s2034_s23 = smov 0  }
   0x6 LB: > { %s1582_s24 = sadd.s32 4294967295, %s1986_s23   ;;  %s2413_s25 = sadd.s32 4294967294, %s1986_s23   ;;  %s1986_s23 = sphi %s2034_s23, %s22_s23   ;;  %s1982_s22 = sphi %s2032_s22, %s2421_s22   ;;  %s1978_s21 = sphi %s2030_s21, %s2420_s21   ;;  %s1974_s20 = sphi %s2028_s20, %s2419_s20   ;;  %s1970_s19 = sphi %s2026_s19, %s2418_s19   ;;  %s1966_s18 = sphi %s2024_s18, %s2417_s18  }
   0x7   : > { %s34_s26 = sadd.s32 1, %s1982_s22  ;;  %s116_s27 = sadd.s32 1, %s1974_s20 }
   0x8   : > { %p36_p0 = scmp.ge.s32.totalorder %s34_s26, 2  ;;  %p126_p1 = scmp.ne.s32.totalorder %s1974_s20, %s1970_s19 }
   0x9   : > { %p127_p2 = scmp.eq.s32.totalorder %s1582_s24, 1  ;;  %p132_p3 = scmp.ne.s32.totalorder %s1970_s19, %s1966_s18 }
   0xa   : > { %s2423_s26 = smov (%p36_p0, %s34_s26), 0  ;;  %p133_p5 = scmp.eq.s32.totalorder %s2413_s25, 1 }
   0xb   : > { %p2066_p4 = por %p127_p2, %p126_p1  ;;  %s111_s29 = ssub.s32 %s1982_s22, %s2423_s26 }
   0xc   : > { %p1587_p6 = scmp.ge.s32.totalorder %s1986_s23, 1  ;;  %p114_p7 = scmp.eq.s32.totalorder %s111_s29, 0 }
   0xd   : > { %p2075_p8 = por %p133_p5, %p132_p3  ;;  %p227_p9 = scmp.lt.s32.totalorder %s1986_s23, 3 }
   0xe   : > { %s2081_s6 = scalar_select %p114_p7, %s1974_s20, %s116_s27  }
   0xf   : > { %p228_p10 = pnand %p1587_p6, %p227_p9 }
  0x10   : > { %p270_p11 = scmp.lt.s32.totalorder (!%p228_p10), %s1978_s21, 1  ;;  %v284_v0 = vld [vmem:[%s2408_s1] sm:$0xff] (!%p228_p10)  ;;  %vm288_vm0 = vcmask (!%p228_p10), 31744   ;;  %vm295_vm1 = vcmask (!%p228_p10), 1043456   ;;  %v285_v2 = vld [vmem:[%s2408_s1 + $0x8] sm:$0xff] (!%p228_p10)  ;;  %s2146_s27 = sand.u32 (!%p228_p10), 1, %s1970_s19  }
  0x11   : > { %231 = sbr.rel (%p228_p10) target bundleno = 570 (0x23a), region = 32  ;;  %1691 = vmatprep.mubr.msk.f32.mxu0 (!%p228_p10), %vm288_vm0, %v284_v0  ;;  %v286_v8 = vld [vmem:[%s2409_s2] sm:$0xf] (!%p228_p10)  ;;  %vm458_vm2 = vcmask (!%p228_p10), 130048   ;;  %s1988_s15 = smov (!%p228_p10), [#allocation2]  }
  0x12   : > { %1694 = vmatprep.subr.msk.mxu1 (!%p228_p10), %vm295_vm1, %v286_v8  ;;  %s1749_s29 = smul.u32 (!%p228_p10), 96, %s2146_s27  ;;  %s1852_s16 = sshll.u32 (!%p228_p10), %s1988_s15, 4  ;;  %s1853_s16 = int_to_ptr.vmem [resolvable:$false] %s1852_s16 }
  0x13   : > { %1695 = vmatpush3.msk.msra.mxu1 (!%p228_p10), %vm295_vm1, %v286_v8  ;;  %s1751_s8 = smul.u32 (!%p228_p10), 1536, %s1978_s21  ;;  %s1854_s17 = scalar_lea.vmem (!%p228_p10), %s1853_s16, 3072 }
  0x14   : > { %1704 = vmatprep.subr.msk.mxu1 (!%p228_p10), %vm295_vm1, %v286_v8  ;;  %s2151_s7 = scalar_lea.vmem (!%p228_p10), [#allocation2], %s1749_s29 }
  0x15   : > { %s2216_s12 = scalar_lea.hbm (!%p228_p10), %s2410_s3, %s1751_s8 }
  0x18   : > { %s271_s9 = scalar_select %p270_p11, %s1978_s21, 1 }
  0x1a   : > { %s1750_s10 = smul.u32 24, %s271_s9  ;;  %s1391_s9 = sshll.u32 %s2151_s7, 4  ;;  %s2218_s9 = int_to_ptr.vmem [resolvable:$true] %s1391_s9 }
  0x1b   : > { %s1848_s14 = scalar_lea.vmem %s2218_s9, 1536  ;;  %p1855_p1 = scmp.lt.s32.totalorder %s2218_s9, %s1853_s16 }
  0x1c   : > { %s274_s13 = scalar_lea.vmem %s2407_s0, %s1750_s10  ;;  %p1849_p12 = scmp.ne.s32.totalorder %s2218_s9, %s1848_s14 }
  0x1d   : > { %v287_v1 = vld [vmem:[%s274_s13] sm:$0xf]  ;;  %v1597_v3 = vld [vmem:[%s274_s13 + $0x4] sm:$0xf]  ;;  %v1606_v4 = vld [vmem:[%s274_s13 + $0x8] sm:$0xf]  ;;  %p1856_p2 = scmp.lt.s32.totalorder %s1854_s17, %s1848_s14 }
  0x1e   : > { %1689 = vmatprep.subr.msk.mxu0 %vm295_vm1, %v287_v1  ;;  %v1615_v5 = vld [vmem:[%s274_s13 + $0xc] sm:$0xf]  ;;  %v1624_v6 = vld [vmem:[%s274_s13 + $0x10] sm:$0xf]  ;;  %v1633_v7 = vld [vmem:[%s274_s13 + $0x14] sm:$0xf]  ;;  %p1850_p13 = pnand %p1849_p12, %p2066_p4 }
  0x1f   : > { %1690 = vmatpush3.msk.msra.mxu0 %vm295_vm1, %v287_v1  ;;  %s1366_s13 = scalar_lea.sflag [#allocation3], %s2146_s27  ;;  %p1857_p3 = por %p1856_p2, %p1855_p1 }
  0x20   : > { %1692 = vmatmul.mubr.msk.f32.vlgmr.msra.gmra.mrb[0].mxu0 %vm288_vm0, %v285_v2  ;;  %1699 = vmatprep.subr.msk.mxu0 %vm295_vm1, %v1597_v3  ;;  %p1851_p0 = pneg %p1850_p13 }
  0x21   : > { %1700 = vmatpush3.msk.msra.mxu0 %vm295_vm1, %v1597_v3  ;;  %1701 = vmatprep.mubr.msk.f32.mxu0 %vm288_vm0, %v284_v0 }
  0x22   : > { %1709 = vmatprep.subr.msk.mxu0 %vm295_vm1, %v1606_v4  ;;  %p1858_p5 = pnand %p1857_p3, %p1851_p0 }
  0x24   : > { %1702 = vmatmul.mubr.msk.f32.vlgmr.msra.gmra.mrb[2].mxu0 %vm288_vm0, %v285_v2 }
  0x25   : > { %1710 = vmatpush3.msk.msra.mxu0 %vm295_vm1, %v1606_v4  ;;  %1711 = vmatprep.mubr.msk.f32.mxu0 %vm288_vm0, %v284_v0 }
  0x26   : > { %1719 = vmatprep.subr.msk.mxu0 %vm295_vm1, %v1615_v5 }
  0x28   : > { %1712 = vmatmul.mubr.msk.f32.vlgmr.msra.gmra.mrb[4].mxu0 %vm288_vm0, %v285_v2 }
  0x29   : > { %1720 = vmatpush3.msk.msra.mxu0 %vm295_vm1, %v1615_v5  ;;  %1721 = vmatprep.mubr.msk.f32.mxu0 %vm288_vm0, %v284_v0 }
  0x2a   : > { %1729 = vmatprep.subr.msk.mxu0 %vm295_vm1, %v1624_v6 }
  0x2c   : > { %1722 = vmatmul.mubr.msk.f32.vlgmr.msra.gmra.mrb[6].mxu0 %vm288_vm0, %v285_v2 }
  0x2d   : > { %1730 = vmatpush3.msk.msra.mxu0 %vm295_vm1, %v1624_v6  ;;  %1731 = vmatprep.mubr.msk.f32.mxu0 %vm288_vm0, %v284_v0 }
  0x2e   : > { %1739 = vmatprep.subr.msk.mxu0 %vm295_vm1, %v1633_v7 }
  0x30   : > { %1732 = vmatmul.mubr.msk.f32.vlgmr.msra.gmra.mrb[8].mxu0 %vm288_vm0, %v285_v2 }
  0x31   : > { %1740 = vmatpush3.msk.msra.mxu0 %vm295_vm1, %v1633_v7  ;;  %1741 = vmatprep.mubr.msk.f32.mxu0 %vm288_vm0, %v284_v0 }
  0x34   : > { %1742 = vmatmul.mubr.msk.f32.vlgmr.msra.gmra.mrb[10].mxu0 %vm288_vm0, %v285_v2 }
  0xf3   : > { %v1693_v9 = vpop.f32.mrb[0].mxu0 }
  0xf4   : > { %v365_v10 = vpop.f32.mrb[1].mxu0 }
  0xf5   : > { %1696 = vmatprep.mubr.msk.f32.mxu1 %vm288_vm0, %v365_v10 }
  0xf6   : > { %1697 = vmatmul.mubr.msk.f32.vlgmr.msra.gmra.mrb[0].mxu1 %vm288_vm0, %v1693_v9 }
  0xf7   : > { %v1703_v11 = vpop.f32.mrb[2].mxu0  ;;  %1705 = vmatpush3.msk.msra.mxu1 %vm295_vm1, %v286_v8 }
  0xf8   : > { %v532_v12 = vpop.f32.mrb[3].mxu0  ;;  %1714 = vmatprep.subr.msk.mxu1 %vm295_vm1, %v286_v8 }
  0xf9   : > { %1706 = vmatprep.mubr.msk.f32.mxu1 %vm288_vm0, %v532_v12 }
  0xfa   : > { %1707 = vmatmul.mubr.msk.f32.vlgmr.msra.gmra.mrb[2].mxu1 %vm288_vm0, %v1703_v11 }
  0xfb   : > { %v1713_v13 = vpop.f32.mrb[4].mxu0  ;;  %1715 = vmatpush3.msk.msra.mxu1 %vm295_vm1, %v286_v8 }
  0xfc   : > { %v696_v14 = vpop.f32.mrb[5].mxu0  ;;  %1724 = vmatprep.subr.msk.mxu1 %vm295_vm1, %v286_v8 }
  0xfd   : > { %1716 = vmatprep.mubr.msk.f32.mxu1 %vm288_vm0, %v696_v14 }
  0xfe   : > { %1717 = vmatmul.mubr.msk.f32.vlgmr.msra.gmra.mrb[4].mxu1 %vm288_vm0, %v1713_v13 }
  0xff   : > { %v1723_v15 = vpop.f32.mrb[6].mxu0  ;;  %1725 = vmatpush3.msk.msra.mxu1 %vm295_vm1, %v286_v8 }
 0x100   : > { %v860_v16 = vpop.f32.mrb[7].mxu0  ;;  %1734 = vmatprep.subr.msk.mxu1 %vm295_vm1, %v286_v8 }
 0x101   : > { %1726 = vmatprep.mubr.msk.f32.mxu1 %vm288_vm0, %v860_v16 }
 0x102   : > { %1727 = vmatmul.mubr.msk.f32.vlgmr.msra.gmra.mrb[6].mxu1 %vm288_vm0, %v1723_v15 }
 0x103   : > { %v1733_v17 = vpop.f32.mrb[8].mxu0  ;;  %1735 = vmatpush3.msk.msra.mxu1 %vm295_vm1, %v286_v8 }
 0x104   : > { %v1024_v18 = vpop.f32.mrb[9].mxu0  ;;  %1744 = vmatprep.subr.msk.mxu1 %vm295_vm1, %v286_v8 }
 0x105   : > { %1736 = vmatprep.mubr.msk.f32.mxu1 %vm288_vm0, %v1024_v18 }
 0x106   : > { %1737 = vmatmul.mubr.msk.f32.vlgmr.msra.gmra.mrb[8].mxu1 %vm288_vm0, %v1733_v17 }
 0x107   : > { %v1743_v19 = vpop.f32.mrb[10].mxu0  ;;  %1745 = vmatpush3.msk.msra.mxu1 %vm295_vm1, %v286_v8 }
 0x108   : > { %v1188_v20 = vpop.f32.mrb[11].mxu0 }
 0x109   : > { %1746 = vmatprep.mubr.msk.f32.mxu1 %vm288_vm0, %v1188_v20 }
 0x10a   : > { %1747 = vmatmul.mubr.msk.f32.vlgmr.msra.gmra.mrb[10].mxu1 %vm288_vm0, %v1743_v19 }
 0x1c9   : > { %v2149_v21 = vpop.f32.mrb[0].mxu1 }
 0x1ca   : > { %460 = vst.msk [vmem:[%s2151_s7 + $0x8] sm:$0xff] %vm458_vm2, %v2149_v21  ;;  %v2156_v22 = vpop.f32.mrb[1].mxu1 }
 0x1cb   : > { %459 = vst.msk [vmem:[%s2151_s7] sm:$0xff] %vm458_vm2, %v2156_v22 }
 0x1cd   : > { %v2161_v23 = vpop.f32.mrb[2].mxu1 }
 0x1ce   : > { %1605 = vst.msk [vmem:[%s2151_s7 + $0x18] sm:$0xff] %vm458_vm2, %v2161_v23  ;;  %v1282_v24 = vmax.f32 %v2149_v21, %v2161_v23  ;;  %v2168_v25 = vpop.f32.mrb[3].mxu1 }
 0x1cf   : > { %1604 = vst.msk [vmem:[%s2151_s7 + $0x10] sm:$0xff] %vm458_vm2, %v2168_v25  ;;  %v1281_v26 = vmax.f32 %v2156_v22, %v2168_v25 }
 0x1d1   : > { %v2175_v27 = vpop.f32.mrb[4].mxu1 }
 0x1d2   : > { %1614 = vst.msk [vmem:[%s2151_s7 + $0x28] sm:$0xff] %vm458_vm2, %v2175_v27  ;;  %v1284_v28 = vmax.f32 %v1282_v24, %v2175_v27  ;;  %v2181_v29 = vpop.f32.mrb[5].mxu1 }
 0x1d3   : > { %1613 = vst.msk [vmem:[%s2151_s7 + $0x20] sm:$0xff] %vm458_vm2, %v2181_v29  ;;  %v1283_v30 = vmax.f32 %v1281_v26, %v2181_v29 }
 0x1d5   : > { %v2187_v31 = vpop.f32.mrb[6].mxu1 }
 0x1d6   : > { %1623 = vst.msk [vmem:[%s2151_s7 + $0x38] sm:$0xff] %vm458_vm2, %v2187_v31  ;;  %v1286_v32 = vmax.f32 %v1284_v28, %v2187_v31  ;;  %v2193_v33 = vpop.f32.mrb[7].mxu1 }
 0x1d7   : > { %1622 = vst.msk [vmem:[%s2151_s7 + $0x30] sm:$0xff] %vm458_vm2, %v2193_v33  ;;  %v1285_v34 = vmax.f32 %v1283_v30, %v2193_v33 }
 0x1d9   : > { %v2199_v35 = vpop.f32.mrb[8].mxu1 }
 0x1da   : > { %1632 = vst.msk [vmem:[%s2151_s7 + $0x48] sm:$0xff] %vm458_vm2, %v2199_v35  ;;  %v2205_v36 = vpop.f32.mrb[9].mxu1  ;;  %v1288_v37 = vmax.f32 %v1286_v32, %v2199_v35 }
 0x1db   : > { %1631 = vst.msk [vmem:[%s2151_s7 + $0x40] sm:$0xff] %vm458_vm2, %v2205_v36  ;;  %v1287_v38 = vmax.f32 %v1285_v34, %v2205_v36 }
 0x1dd   : > { %v1748_v39 = vpop.f32.mrb[10].mxu1 }
 0x1de   : > { %1641 = vst.msk [vmem:[%s2151_s7 + $0x58] sm:$0xff] %vm458_vm2, %v1748_v39  ;;  %v2222_v40 = vmax.f32 %v1288_v37, %v1748_v39  ;;  %v1269_v41 = vpop.f32.mrb[11].mxu1 }
 0x1df   : > { %1640 = vst.msk [vmem:[%s2151_s7 + $0x50] sm:$0xff] %vm458_vm2, %v1269_v41  ;;  %v2226_v42 = vmax.f32 %v1287_v38, %v1269_v41 }
 0x1e0   : > { %v1292_v43 = vsub.f32 %v1748_v39, %v2222_v40  ;;  %v1300_v44 = vsub.f32 %v2199_v35, %v2222_v40  ;;  %v1312_v45 = vsub.f32 %v2187_v31, %v2222_v40  ;;  %v1324_v46 = vsub.f32 %v2175_v27, %v2222_v40 }
 0x1e1   : > { %1861 = shalt.err (!%p1858_p5)
}
 0x1e2   : > { %s1862_s29 = scalar_lea.hbm %s2216_s12, 1536  ;;  %s1866_s10 = scalar_lea.hbm %s2410_s3, 3072 }
 0x1e3   : > { %p1863_p6 = scmp.ne.s32.totalorder %s2216_s12, %s1862_s29  ;;  %p1867_p10 = scmp.lt.u32.totalorder %s2216_s12, %s2410_s3 }
 0x1e4   : > { %p1868_p11 = scmp.lt.u32.totalorder %s1866_s10, %s1862_s29  ;;  %p1870_p13 = scmp.lt.u32.totalorder %s1862_s29, %s2216_s12 }
 0x1e5   : > { %p1864_p7 = pnand %p1863_p6, %p2066_p4 }
 0x1e6   : > { %p1869_p12 = por %p1868_p11, %p1867_p10 }
 0x1e7   : > { %p1865_p9 = pneg %p1864_p7 }
 0x1e8   : > { %p1871_p0 = por %p1870_p13, %p1869_p12 }
 0x1ea   : > { %p1872_p1 = pnand %p1871_p0, %p1865_p9 }
 0x1ec   : > { %1875 = shalt.err (!%p1872_p1)
}
 0x1ed   : > { %s1989_s14 = smov 128   ;;  %s1990_s16 = smov 8   ;;  %v1336_v47 = vsub.f32 %v2161_v23, %v2222_v40  ;;  %v1348_v48 = vsub.f32 %v2149_v21, %v2222_v40  ;;  %v1291_v49 = vsub.f32 %v1269_v41, %v2226_v42  ;;  %v1299_v50 = vsub.f32 %v2205_v36, %v2226_v42 }
 0x1ee   : > { %1752 = dma.vmem_to_hbm [thread:$0]  (%p2066_p4), %s2218_s9, 1536, %s2216_s12, %s1366_s13, %s1989_s14, %s1989_s14, %s1990_s16   ;;  %v1295_v51 = vmul.f32 1.442695, %v1292_v43  ;;  %v1303_v52 = vmul.f32 1.442695, %v1300_v44  ;;  %v1311_v53 = vsub.f32 %v2193_v33, %v2226_v42  ;;  %v1323_v55 = vsub.f32 %v2181_v29, %v2226_v42 }
 0x1ef   : > { %v1315_v54 = vmul.f32 1.442695, %v1312_v45  ;;  %v1327_v56 = vmul.f32 1.442695, %v1324_v46  ;;  %v1339_v57 = vmul.f32 1.442695, %v1336_v47  ;;  %v1335_v60 = vsub.f32 %v2168_v25, %v2226_v42 }
 0x1f0   : > { %1820 = vpow2.f32 %v1295_v51  ;;  %v1351_v58 = vmul.f32 1.442695, %v1348_v48  ;;  %v1293_v59 = vmul.f32 1.442695, %v1291_v49  ;;  %v1347_v61 = vsub.f32 %v2156_v22, %v2226_v42  ;;  %s1588_s9 = sshll.u32 %s2146_s27, 4  ;;  %s2311_s17 = sand.u32 1, %s1582_s24  }
 0x1f1   : > { %1822 = vpow2.f32 %v1303_v52  ;;  %v1301_v62 = vmul.f32 1.442695, %v1299_v50  ;;  %vm1307_vm3 = vcmp.ge.f32.partialorder %v2205_v36, %v2226_v42  ;;  %vm1308_vm4 = vcmp.ge.f32.partialorder %v2199_v35, %v2222_v40  ;;  %s2300_s12 = scalar_lea.vmem [#allocation6], %s1588_s9  ;;  %s262_s13 = scalar_lea.vmem [#allocation4], %s1588_s9 }
 0x1f2   : > { %vm1319_vm5 = vcmp.ge.f32.partialorder %v2193_v33, %v2226_v42  ;;  %1824 = vpow2.f32 %v1315_v54  ;;  %v1313_v63 = vmul.f32 1.442695, %v1311_v53  ;;  %v1325_v0 = vmul.f32 1.442695, %v1323_v55  ;;  %s1651_s29 = sshll.u32 %s1978_s21, 8  ;;  %s1409_s7 = sshll.u32 %s262_s13, 4  ;;  %s2320_s7 = int_to_ptr.vmem [resolvable:$true] %s1409_s7 }
 0x1f3   : > { %v1991_v1 = vmov 5   ;;  %1826 = vpow2.f32 %v1327_v56  ;;  %vm1320_vm6 = vcmp.ge.f32.partialorder %v2187_v31, %v2222_v40  ;;  %vm1331_vm7 = vcmp.ge.f32.partialorder %v2181_v29, %v2226_v42  ;;  %s1427_s8 = sshll.u32 %s2300_s12, 4  ;;  %s2318_s15 = scalar_lea.hbm %s2411_s4, %s1651_s29  ;;  %s2327_s8 = int_to_ptr.vmem [resolvable:$true] %s1427_s8 }
 0x1f4   : > { %v1309_v2 = vsel %vm1307_vm3, 4, %v1991_v1  ;;  %v1310_v3 = vsel %vm1308_vm4, 4, %v1991_v1  ;;  %1828 = vpow2.f32 %v1339_v57  ;;  %vm1332_vm8 = vcmp.ge.f32.partialorder %v2175_v27, %v2222_v40  ;;  %s2325_s24 = scalar_lea.hbm %s2412_s5, %s1651_s29  ;;  %s1371_s21 = scalar_lea.sflag [#allocation5], %s2311_s17 }
 0x1f5   : > { %v1321_v4 = vsel %vm1319_vm5, 3, %v1309_v2  ;;  %v1322_v5 = vsel %vm1320_vm6, 3, %v1310_v3  ;;  %1830 = vpow2.f32 %v1293_v59  ;;  %vm1343_vm9 = vcmp.ge.f32.partialorder %v2168_v25, %v2226_v42  ;;  %s1992_s10 = smov [#allocation4]  }
 0x1f6   : > { %v1333_v6 = vsel %vm1331_vm7, 2, %v1321_v4  ;;  %v1334_v7 = vsel %vm1332_vm8, 2, %v1322_v5  ;;  %1832 = vpow2.f32 %v1301_v62  ;;  %vm1344_vm10 = vcmp.ge.f32.partialorder %v2161_v23, %v2222_v40  ;;  %s1880_s11 = sshll.u32 %s1992_s10, 4  ;;  %s1881_s11 = int_to_ptr.vmem [resolvable:$false] %s1880_s11 }
 0x1f7   : > { %v1345_v8 = vsel %vm1343_vm9, 1, %v1333_v6  ;;  %vm1355_vm11 = vcmp.ge.f32.partialorder %v2156_v22, %v2226_v42  ;;  %1834 = vpow2.f32 %v1351_v58  ;;  %v1346_v9 = vsel %vm1344_vm10, 1, %v1334_v7  ;;  %s1882_s25 = scalar_lea.vmem %s1881_s11, 512  ;;  %p1883_p6 = scmp.lt.s32.totalorder %s2320_s7, %s1881_s11 }
 0x1f8   : > { %vm1356_vm12 = vcmp.ge.f32.partialorder %v2149_v21, %v2222_v40  ;;  %v1357_v10 = vsel %vm1355_vm11, 0, %v1345_v8  ;;  %1836 = vpow2.f32 %v1313_v63  ;;  %v1337_v11 = vmul.f32 1.442695, %v1335_v60 }
 0x1f9   : > { %v1358_v12 = vsel %vm1356_vm12, 0, %v1346_v9  ;;  %1363 = vst.msk [vmem:[%s2300_s12] sm:$0xff] %vm458_vm2, %v1357_v10  ;;  %1838 = vpow2.f32 %v1325_v0  ;;  %v1349_v15 = vmul.f32 1.442695, %v1347_v61 }
 0x1fa   : > { %v1821_v13 = vpop.eup %1820  ;;  %1364 = vst.msk [vmem:[%s2300_s12 + $0x8] sm:$0xff] %vm458_vm2, %v1358_v12  ;;  %1840 = vpow2.f32 %v1337_v11  ;;  %s1876_s12 = scalar_lea.vmem %s2320_s7, 256 }
 0x1fb   : > { %v1823_v14 = vpop.eup %1822  ;;  %1842 = vpow2.f32 %v1349_v15  ;;  %p1877_p2 = scmp.ne.s32.totalorder %s2320_s7, %s1876_s12  ;;  %p1884_p7 = scmp.lt.s32.totalorder %s1882_s25, %s1876_s12 }
 0x1fc   : > { %v1306_v16 = vadd.f32 %v1823_v14, %v1821_v13  ;;  %v1825_v17 = vpop.eup %1824 }
 0x1fd   : > { %v1827_v18 = vpop.eup %1826  ;;  %p1878_p3 = pnand %p1877_p2, %p2066_p4  ;;  %p1885_p9 = por %p1884_p7, %p1883_p6 }
 0x1fe   : > { %v1318_v19 = vadd.f32 %v1825_v17, %v1306_v16  ;;  %v1829_v20 = vpop.eup %1828 }
 0x1ff   : > { %v1831_v21 = vpop.eup %1830  ;;  %p1879_p5 = pneg %p1878_p3 }
 0x200   : > { %v1330_v22 = vadd.f32 %v1827_v18, %v1318_v19  ;;  %v1833_v23 = vpop.eup %1832 }
 0x201   : > { %v1835_v24 = vpop.eup %1834  ;;  %v1305_v26 = vadd.f32 %v1833_v23, %v1831_v21  ;;  %p1886_p10 = pnand %p1885_p9, %p1879_p5 }
 0x202   : > { %v1342_v25 = vadd.f32 %v1829_v20, %v1330_v22  ;;  %v1837_v27 = vpop.eup %1836 }
 0x203   : > { %v1317_v29 = vadd.f32 %v1837_v27, %v1305_v26  ;;  %v1839_v30 = vpop.eup %1838 }
 0x204   : > { %v1354_v28 = vadd.f32 %v1835_v24, %v1342_v25  ;;  %v1841_v32 = vpop.eup %1840 }
 0x205   : > { %v1329_v31 = vadd.f32 %v1839_v30, %v1317_v29  ;;  %v1843_v34 = vpop.eup %1842 }
 0x206   : > { %1844 = vrcp.f32 %v1354_v28 }
 0x207   : > { %v1341_v33 = vadd.f32 %v1841_v32, %v1329_v31 }
 0x209   : > { %v1353_v35 = vadd.f32 %v1843_v34, %v1341_v33 }
 0x20b   : > { %1846 = vrcp.f32 %v1353_v35 }
 0x210   : > { %v1845_v36 = vpop.eup %1844 }
 0x211   : > { %1362 = vst.msk [vmem:[%s262_s13 + $0x8] sm:$0xff] %vm458_vm2, %v1845_v36 }
 0x215   : > { %v1847_v37 = vpop.eup %1846 }
 0x216   : > { %1361 = vst.msk [vmem:[%s262_s13] sm:$0xff] %vm458_vm2, %v1847_v37 }
 0x217   : > { %1889 = shalt.err (!%p1886_p10)
}
 0x218   : > { %s1890_s13 = scalar_lea.hbm %s2318_s15, 256  ;;  %s1894_s9 = scalar_lea.hbm %s2411_s4, 512 }
 0x219   : > { %p1891_p11 = scmp.ne.s32.totalorder %s2318_s15, %s1890_s13  ;;  %p1895_p0 = scmp.lt.u32.totalorder %s2318_s15, %s2411_s4 }
 0x21a   : > { %p1896_p1 = scmp.lt.u32.totalorder %s1894_s9, %s1890_s13  ;;  %p1898_p3 = scmp.lt.u32.totalorder %s1890_s13, %s2318_s15 }
 0x21b   : > { %p1892_p12 = pnand %p1891_p11, %p2066_p4 }
 0x21c   : > { %p1897_p2 = por %p1896_p1, %p1895_p0 }
 0x21d   : > { %p1893_p13 = pneg %p1892_p12 }
 0x21e   : > { %p1899_p5 = por %p1898_p3, %p1897_p2 }
 0x220   : > { %p1900_p6 = pnand %p1899_p5, %p1893_p13 }
 0x222   : > { %1903 = shalt.err (!%p1900_p6)
}
 0x223   : > { %1753 = dma.vmem_to_hbm [thread:$0]  (%p2066_p4), %s2320_s7, 256, %s2318_s15, %s1371_s21, %s1989_s14, %s1989_s14, %s1990_s16  }
 0x224   : > { %s1904_s25 = scalar_lea.vmem %s2327_s8, 256  ;;  %s1993_s12 = smov [#allocation6]  }
 0x225   : > { %p1905_p7 = scmp.ne.s32.totalorder %s2327_s8, %s1904_s25  ;;  %s1908_s13 = sshll.u32 %s1993_s12, 4  ;;  %s1909_s13 = int_to_ptr.vmem [resolvable:$false] %s1908_s13 }
 0x226   : > { %s1910_s29 = scalar_lea.vmem %s1909_s13, 512  ;;  %p1911_p11 = scmp.lt.s32.totalorder %s2327_s8, %s1909_s13 }
 0x227   : > { %p1906_p9 = pnand %p1905_p7, %p2066_p4  ;;  %p1912_p12 = scmp.lt.s32.totalorder %s1910_s29, %s1904_s25 }
 0x229   : > { %p1907_p10 = pneg %p1906_p9  ;;  %p1913_p13 = por %p1912_p12, %p1911_p11 }
 0x22b   : > { %p1914_p0 = pnand %p1913_p13, %p1907_p10 }
 0x22d   : > { %1917 = shalt.err (!%p1914_p0)
}
 0x22e   : > { %s1918_s7 = scalar_lea.hbm %s2325_s24, 256  ;;  %s1922_s9 = scalar_lea.hbm %s2412_s5, 512 }
 0x22f   : > { %p1919_p1 = scmp.ne.s32.totalorder %s2325_s24, %s1918_s7  ;;  %p1923_p5 = scmp.lt.u32.totalorder %s2325_s24, %s2412_s5 }
 0x230   : > { %p1924_p6 = scmp.lt.u32.totalorder %s1922_s9, %s1918_s7  ;;  %p1926_p9 = scmp.lt.u32.totalorder %s1918_s7, %s2325_s24 }
 0x231   : > { %p1920_p2 = pnand %p1919_p1, %p2066_p4 }
 0x232   : > { %p1925_p7 = por %p1924_p6, %p1923_p5 }
 0x233   : > { %p1921_p3 = pneg %p1920_p2 }
 0x234   : > { %p1927_p10 = por %p1926_p9, %p1925_p7 }
 0x236   : > { %p1928_p11 = pnand %p1927_p10, %p1921_p3 }
 0x238   : > { %1931 = shalt.err (!%p1928_p11)
}
 0x239   : > { %1754 = dma.vmem_to_hbm [thread:$0]  (%p2066_p4), %s2327_s8, 256, %s2325_s24, %s1371_s21, %s1989_s14, %s1989_s14, %s1990_s16  }
 0x23a PF: > { %p1768_p12 = scmp.ge.s32.totalorder %s1986_s23, 2  ;;  %s1442_s25 = sand.u32 1, %s1966_s18  }
 0x23b   : > { %s1443_s12 = scalar_lea.sflag [#allocation3], %s1442_s25 }
 0x23c   : > { %p1759_p13 = pnand %p1768_p12, %p2075_p8 }
 0x23e   : > { %1957 = dma.done.wait (!%p1759_p13), %s1443_s12, 1536  }
 0x23f   : > { %1959 = vsyncadd (!%p1759_p13), %s1443_s12, 4294965760  ;;  %s2416_s28 = sadd.s32 4294967294, %s1986_s23  }
 0x240   : > { %s1451_s13 = sand.u32 1, %s2416_s28  }
 0x241   : > { %s1452_s29 = scalar_lea.sflag [#allocation5], %s1451_s13 }
 0x242   : > { %1961 = dma.done.wait (!%p1759_p13), %s1452_s29, 512  }
 0x243   : > { %1963 = vsyncadd (!%p1759_p13), %s1452_s29, 4294966784  ;;  %s22_s23 = sadd.s32 1, %s1986_s23   ;;  %s2417_s18 = smov %s1970_s19 }
 0x244   : > { %p19_p4 = scmp.ge.s32.totalorder %s22_s23, 4   ;;  %s2418_s19 = smov %s1974_s20 }
 0x245   : > { %s2419_s20 = smov %s2081_s6  ;;  %s2420_s21 = smov %s1982_s22 }
 0x246   : > { %s2421_s22 = smov %s2423_s26  ;;  %21 = sbr.rel (!%p19_p4) target bundleno = 6 (0x6), region = 112 }
 0x24d   :  { %1466 = vsyncpa [#allocation3], 1 }
 0x24e   :  { %1468 = vsyncpa [#allocation3 + $0x1], 1 }
 0x24f   :  { %1469 = vsyncpa [#allocation5], 1 }
 0x250   :  { %1471 = vsyncpa [#allocation5 + $0x1], 1 }

</bundles_post_ra>
